<compile_context>
chip_gen: v7x
topology: tpu7x:2x2x1
jax: 0.10.0
libtpu: 0.0.40
codegen_flags: <defaults>
</compile_context>

<pallas_src>
import functools

import numpy as np
import jax
import jax.numpy as jnp
from jax.experimental import pallas as pl
from jax.experimental.pallas import tpu as pltpu


# --------------------------------------------------------------------------------------
# Kernel
# --------------------------------------------------------------------------------------
def rwkv_block_kernel(x_ref,
                      ln1_w_ref, mk_ref, mv_ref, mr_ref, mg_ref,
                      wr_ref, wk_ref, wv_ref, wg_ref,
                      wmat_ref, wkdec_ref, wbdec_ref, wsdec_ref,
                      gnw_ref, gnb_ref, wout_ref,
                      ln2_w_ref, cmk_ref, cmr_ref, wck_ref, wcv_ref, wcr_ref,
                      out_ref,
                      y_scr_ref,
                      *, H, Q, cm_step):
    f32 = jnp.float32
    bf16 = jnp.bfloat16

    x = x_ref[...]                              # (T, C) f32, current batch element
    T, C = x.shape
    N = C // H
    n_chunks = T // Q

    def layer_norm(v, w, eps=1e-5):
        mu = jnp.mean(v, axis=-1, keepdims=True)
        var = jnp.mean((v - mu) ** 2, axis=-1, keepdims=True)
        return (v - mu) * jax.lax.rsqrt(var + eps) * w

    def time_shift(v):
        # == nn.ZeroPad2d((0, 0, 1, -1)): shifted[t] = v[t-1], shifted[0] = 0
        rolled = pltpu.roll(v, shift=1, axis=0)                     # XLU sublane rotate
        row = jax.lax.broadcasted_iota(jnp.int32, v.shape, 0)
        return jnp.where(row == 0, 0.0, rolled)

    def mm(a, b):
        # bf16 operands, f32 accumulation on the MXU
        return jnp.dot(a.astype(bf16), b.astype(bf16), preferred_element_type=f32)

    # ------------------------- TimeMix (RWKV_TimeMix_x051a) -------------------------
    x1 = layer_norm(x, ln1_w_ref[...])
    xx = time_shift(x1) - x1
    xk = x1 + xx * mk_ref[...]
    xv = x1 + xx * mv_ref[...]
    xr = x1 + xx * mr_ref[...]
    xg = x1 + xx * mg_ref[...]

    # Fused full-width projections (one (T,C)@(C,C) matmul each, not H skinny ones).
    # Cast to bf16 ONCE; only the bf16 copies stay live (halves these buffers' VMEM).
    r_all = mm(xr, wr_ref[...]).astype(bf16)    # (T, C) bf16
    k_all = mm(xk, wk_ref[...]).astype(bf16)    # (T, C) bf16
    v_all = mm(xv, wv_ref[...]).astype(bf16)    # (T, C) bf16
    g_lin = mm(xg, wg_ref[...])                 # (T, C) f32
    g_all = (g_lin * jax.nn.sigmoid(g_lin)).astype(bf16)   # SiLU, keep only bf16 copy

    gn_eps = 1e-5 * 64   # exactly nn.GroupNorm(n_head, n_embd, eps=1e-05 * 64)

    # TODO(synk): batch the per-head rr@kk^T score matmuls (contraction dim N<=64
    # underfills the 256-wide MXU on v6e/v7x) via a head-batched dot_general.
    for h in range(H):                          # static unroll over heads
        c0, c1 = h * N, (h + 1) * N
        r_h = r_all[:, c0:c1]                   # (T, N) bf16
        k_h = k_all[:, c0:c1]
        v_h = v_all[:, c0:c1]
        wmat_h = wmat_ref[h]                    # (Q, Q) decay matrix (u on diagonal)
        wk_h = wkdec_ref[h]                     # (Q, 1)   wdec^(Q-1-q)
        wb_h = wbdec_ref[h]                     # (Q, 1)   wdec^i
        ws_h = wsdec_ref[h]                     # (1, 1)   wdec^Q
        gnw_h = gnw_ref[h]                      # (1, N)
        gnb_h = gnb_ref[h]                      # (1, N)

        # Chunked recurrence (matches PyTorch: y = rr@kk*w@vv + rr@state*wb,
        # state = ws*state + (kk*wk)@vv).  Uniform body, state starts at zeros.
        state = jnp.zeros((N, N), f32)
        # TODO(synk): for very large T/Q run this as lax.fori_loop over ref-backed
        # pl.ds slices to bound the unrolled schedule; trip counts here are small.
        for ci in range(n_chunks):
            t0, t1 = ci * Q, (ci + 1) * Q
            rr = r_h[t0:t1]                     # (Q, N) bf16
            kk = k_h[t0:t1]
            vv = v_h[t0:t1]
            a = jnp.dot(rr, kk.T, preferred_element_type=f32)        # (Q, Q) f32
            y_i = jnp.dot((a * wmat_h).astype(bf16), vv,
                          preferred_element_type=f32)                # (Q, N) f32
            y_i = y_i + jnp.dot(rr, state.astype(bf16),
                                preferred_element_type=f32) * wb_h
            state = ws_h * state + jnp.dot((kk * wk_h).astype(bf16).T, vv,
                                           preferred_element_type=f32)   # (N, N)

            # GroupNorm (one group per head) reduces only over N -> apply per chunk.
            mu = jnp.mean(y_i, axis=-1, keepdims=True)
            var = jnp.mean((y_i - mu) ** 2, axis=-1, keepdims=True)
            y_n = (y_i - mu) * jax.lax.rsqrt(var + gn_eps) * gnw_h + gnb_h

            # Gate and write straight into the (T, C) bf16 scratch -- no lane-axis
            # concatenates of H pieces, no second full (T,C) assembled f32 buffer.
            # TODO(synk): process head pairs so these N-wide stores are 128-lane aligned.
            y_scr_ref[t0:t1, c0:c1] = (y_n * g_all[t0:t1, c0:c1]).astype(bf16)

    # Fused output projection: ONE (T,C)@(C,C) matmul (dropout p=0.0 -> identity)
    x = x + jnp.dot(y_scr_ref[...], wout_ref[...], preferred_element_type=f32)

    # ----------------------- ChannelMix (RWKV_ChannelMix_x051a) ---------------------
    x2 = layer_norm(x, ln2_w_ref[...])
    xx2 = time_shift(x2) - x2
    xck = (x2 + xx2 * cmk_ref[...]).astype(bf16)
    xcr = x2 + xx2 * cmr_ref[...]

    # Tile the 3C hidden dim so the (T, 3C) "kk" buffer is never fully materialized.
    CH = wck_ref.shape[1]                       # 3C
    step = min(CH, cm_step)
    cm_v = jnp.zeros((T, C), f32)
    for s0 in range(0, CH, step):
        s1 = min(s0 + step, CH)
        kk_c = jnp.dot(xck, wck_ref[:, s0:s1], preferred_element_type=f32)
        kk_c = jnp.maximum(kk_c, 0.0)
        kk_c = kk_c * kk_c                      # relu(x)^2
        cm_v = cm_v + jnp.dot(kk_c.astype(bf16), wcv_ref[s0:s1, :],
                              preferred_element_type=f32)
    rr_c = jax.nn.sigmoid(mm(xcr, wcr_ref[...]))
    out_ref[...] = x + rr_c * cm_v


_WEIGHT_ORDER = ["ln1_w", "mk", "mv", "mr", "mg",
                 "wr", "wk", "wv", "wg",
                 "wmat", "wk_dec", "wb_dec", "ws_dec",
                 "gnw", "gnb", "wout",
                 "ln2_w", "cmk", "cmr", "wck", "wcv", "wcr"]


def _weight_spec(shape):
    """Full-array, grid-invariant weight spec, single-buffered (no wasted VMEM)."""
    nd = len(shape)
    index_map = lambda b: (0,) * nd
    try:
        return pl.BlockSpec(shape, index_map, pipeline_mode=pl.Buffered(1))
    except Exception:           # older jax without pipeline_mode -> default buffering
        return pl.BlockSpec(shape, index_map)


def _vmem_limit_bytes():
    """Raise the scoped VMEM limit above the 32 MiB default, capped per chip."""
    try:
        cap = int(pltpu.get_tpu_info().vmem_capacity_bytes)
        return max(32 << 20, min(cap - (8 << 20), 112 << 20))
    except Exception:
        return 64 << 20


def rwkv_block(x, params, *, cm_step=1024):
    B, T, C = x.shape
    H = params["gnw"].shape[0]
    Q = params["wmat"].shape[-1]
    assert T % Q == 0 and C % H == 0
    weights = [params[n] for n in _WEIGHT_ORDER]
    in_specs = [pl.BlockSpec((None, T, C), lambda b: (b, 0, 0))]    # per-batch slab
    in_specs += [_weight_spec(w.shape) for w in weights]
    out_specs = pl.BlockSpec((None, T, C), lambda b: (b, 0, 0))
    kernel = functools.partial(rwkv_block_kernel, H=H, Q=Q, cm_step=cm_step)
    # TODO(synk): for v7x (64 MiB VMEM) at large T/C, add a sequence-chunk grid axis
    # (marked "arbitrary", B stays "parallel") carrying the per-head (N,N) state and
    # the previous chunk's last row (for time_shift) in VMEM scratch, so only (Q, C)
    # activation slabs are resident per step; use cm_step=512 there as well.
    return pl.pallas_call(
        kernel,
        out_shape=jax.ShapeDtypeStruct((B, T, C), jnp.float32),
        grid=(B,),
        in_specs=in_specs,
        out_specs=out_specs,
        scratch_shapes=[pltpu.VMEM((T, C), jnp.bfloat16)],          # assembled y*g
        compiler_params=pltpu.CompilerParams(
            dimension_semantics=("parallel",),
            vmem_limit_bytes=_vmem_limit_bytes()),
    )(x, *weights)


# --------------------------------------------------------------------------------------
# Deterministic parameter construction (mirrors the PyTorch __init__ formulas)
# --------------------------------------------------------------------------------------
def make_params(key, *, C, H, T, n_layer=2, layer_id=1, chunk_len=None):
    N = C // H
    f32 = jnp.float32
    keys = jax.random.split(key, 8)

    def lin(k, fan_in, fan_out):
        bound = 1.0 / np.sqrt(fan_in)
        return jax.random.uniform(k, (fan_in, fan_out), f32, -bound, bound)

    ratio_0_to_1 = layer_id / (n_layer - 1)
    ratio_1_to_almost0 = 1.0 - layer_id / n_layer
    ddd = jnp.arange(C, dtype=f32) / C

    # TimeMix mixing coefficients
    t_maa_k = (1.0 - ddd ** ratio_1_to_almost0).reshape(1, C)
    t_maa_v = (1.0 - (ddd ** ratio_1_to_almost0 + 0.3 * ratio_0_to_1)).reshape(1, C)
    t_maa_r = (1.0 - ddd ** (0.5 * ratio_1_to_almost0)).reshape(1, C)
    t_maa_g = (1.0 - ddd ** (0.5 * ratio_1_to_almost0)).reshape(1, C)
    hh = jnp.arange(H, dtype=f32)
    decay_speed = -6.0 + 5.0 * (hh / (H - 1)) ** (0.7 + 1.3 * ratio_0_to_1)
    time_faaaa = ratio_0_to_1 * (1.0 - hh / (H - 1))

    # Chunk length: the recurrence is exact for any divisor of T, so Q is a tunable.
    # Prefer 128 (matches v5e MXU tile, halves quadratic-attention FLOPs vs 256).
    if chunk_len is not None:
        Q = chunk_len
    elif T % 128 == 0:
        Q = 128
    else:
        Q = T
    assert T % Q == 0

    wdec = jnp.exp(-jnp.exp(decay_speed))                      # (H,)
    i_idx = jnp.arange(Q)[:, None]
    j_idx = jnp.arange(Q)[None, :]
    diff = jnp.maximum(i_idx - j_idx - 1, 0).astype(f32)
    pw = wdec[:, None, None] ** diff[None]
    wmat = jnp.where(j_idx[None] > i_idx[None], 0.0,
                     jnp.where(j_idx[None] == i_idx[None],
                               time_faaaa[:, None, None], pw)).astype(f32)   # (H,Q,Q)
    q_idx = jnp.arange(Q, dtype=f32)
    wkq = wdec[:, None] ** (Q - 1.0 - q_idx)[None, :]          # (H,Q)  scales k columns
    wbq = wdec[:, None] ** q_idx[None, :]                      # (H,Q)  scales rr@state rows
    wsq = wdec ** Q                                            # (H,)   state decay

    # ChannelMix mixing coefficients
    c_maa_k = (1.0 - ddd ** ratio_1_to_almost0).reshape(1, C)
    c_maa_r = (1.0 - ddd ** ratio_1_to_almost0).reshape(1, C)

    # Linear weights (pre-transposed, stored bf16 for MXU-native matmuls)
    wr_full = lin(keys[0], C, C).astype(jnp.bfloat16)
    wk_full = lin(keys[1], C, C).astype(jnp.bfloat16)
    wv_full = lin(keys[2], C, C).astype(jnp.bfloat16)
    wg_full = lin(keys[3], C, C).astype(jnp.bfloat16)
    wout_full = lin(keys[4], C, C).astype(jnp.bfloat16)
    wck_full = lin(keys[5], C, 3 * C).astype(jnp.bfloat16)
    wcv_full = lin(keys[6], 3 * C, C).astype(jnp.bfloat16)
    wcr_full = lin(keys[7], C, C).astype(jnp.bfloat16)

    kparams = dict(
        ln1_w=jnp.ones((1, C), f32),
        mk=t_maa_k, mv=t_maa_v, mr=t_maa_r, mg=t_maa_g,
        wr=wr_full, wk=wk_full, wv=wv_full, wg=wg_full,
        wmat=wmat,                                   # keep decay tensors f32 (small);
        wk_dec=wkq.reshape(H, Q, 1),                 # bf16 is a v7x-only VMEM trim
        wb_dec=wbq.reshape(H, Q, 1),
        ws_dec=wsq.reshape(H, 1, 1),
        gnw=jnp.ones((H, 1, N), f32), gnb=jnp.zeros((H, 1, N), f32),
        wout=wout_full,
        ln2_w=jnp.ones((1, C), f32),
        cmk=c_maa_k, cmr=c_maa_r,
        wck=wck_full, wcv=wcv_full, wcr=wcr_full,
    )
    # Reference uses the SAME (bf16-rounded) weight values, but computes in f32.
    fparams = dict(
        H=H,
        ln1_w=jnp.ones((C,), f32), ln2_w=jnp.ones((C,), f32),
        t_maa_k=t_maa_k, t_maa_v=t_maa_v, t_maa_r=t_maa_r, t_maa_g=t_maa_g,
        wmat=wmat, wkq=wkq, wbq=wbq, ws=wsq,
        wr=wr_full.astype(f32), wk=wk_full.astype(f32),
        wv=wv_full.astype(f32), wg=wg_full.astype(f32), wout=wout_full.astype(f32),
        c_maa_k=c_maa_k, c_maa_r=c_maa_r,
        wck=wck_full.astype(f32), wcv=wcv_full.astype(f32), wcr=wcr_full.astype(f32),
    )
    return kparams, fparams


# --------------------------------------------------------------------------------------
# Pure-JAX reference (mirrors the PyTorch forward, f32) for validation
# --------------------------------------------------------------------------------------
def reference_block(x, fp):
    B, T, C = x.shape
    H = fp["H"]
    N = C // H
    Q = fp["wmat"].shape[-1]

    def ln(v, w, eps=1e-5):
        mu = v.mean(-1, keepdims=True)
        var = ((v - mu) ** 2).mean(-1, keepdims=True)
        return (v - mu) / jnp.sqrt(var + eps) * w

    def tshift(v):
        return jnp.pad(v, ((0, 0), (1, 0), (0, 0)))[:, :T, :]

    # TimeMix
    x1 = ln(x, fp["ln1_w"])
    xx = tshift(x1) - x1
    xk = x1 + xx * fp["t_maa_k"]
    xv = x1 + xx * fp["t_maa_v"]
    xr = x1 + xx * fp["t_maa_r"]
    xg = x1 + xx * fp["t_maa_g"]
    r = (xr @ fp["wr"]).reshape(B, T, H, N).transpose(0, 2, 1, 3)   # (B,H,T,N)
    k = (xk @ fp["wk"]).reshape(B, T, H, N).transpose(0, 2, 3, 1)   # (B,H,N,T)
    v = (xv @ fp["wv"]).reshape(B, T, H, N).transpose(0, 2, 1, 3)   # (B,H,T,N)
    g = jax.nn.silu(xg @ fp["wg"])

    w = fp["wmat"][None]                           # (1,H,Q,Q)
    wkd = fp["wkq"][None, :, None, :]              # (1,H,1,Q)
    wbd = fp["wbq"][None, :, :, None]              # (1,H,Q,1)
    wsd = fp["ws"][None, :, None, None]            # (1,H,1,1)
    state = jnp.zeros((B, H, N, N), x.dtype)
    ys = []
    for i in range(T // Q):
        rr = r[:, :, i * Q:(i + 1) * Q, :]
        kk = k[:, :, :, i * Q:(i + 1) * Q]
        vv = v[:, :, i * Q:(i + 1) * Q, :]
        ys.append(((rr @ kk) * w) @ vv + (rr @ state) * wbd)
        state = wsd * state + (kk * wkd) @ vv
    y = jnp.concatenate(ys, axis=2)                # (B,H,T,N)
    y = y.transpose(0, 2, 1, 3).reshape(B * T, H, N)
    mu = y.mean(-1, keepdims=True)
    var = ((y - mu) ** 2).mean(-1, keepdims=True)
    y = (y - mu) / jnp.sqrt(var + 1e-5 * 64)
    y = y.reshape(B, T, C) * g
    x = x + y @ fp["wout"]

    # ChannelMix
    x2 = ln(x, fp["ln2_w"])
    xx2 = tshift(x2) - x2
    xck = x2 + xx2 * fp["c_maa_k"]
    xcr = x2 + xx2 * fp["c_maa_r"]
    kk = jnp.maximum(xck @ fp["wck"], 0.0) ** 2
    vv = kk @ fp["wcv"]
    rr = jax.nn.sigmoid(xcr @ fp["wcr"])
    return x + rr * vv


# --------------------------------------------------------------------------------------
if __name__ == "__main__":
    B, T, C, H = 2, 8, 32, 4          # batch, seq, n_embd, n_head (head_size = 8)
    key = jax.random.PRNGKey(0)
    kx, kp = jax.random.split(key)
    x = jax.random.normal(kx, (B, T, C), jnp.float32)

    kparams, fparams = make_params(kp, C=C, H=H, T=T, n_layer=2, layer_id=1)

    out = jax.block_until_ready(rwkv_block(x, kparams))

    ref = reference_block(x, fparams)
    # bf16 matmul operands in the kernel vs f32 reference (same bf16-rounded weights)
    # -> slightly looser tolerance than a pure-f32 comparison.
    np.testing.assert_allclose(np.asarray(out), np.asarray(ref), rtol=5e-2, atol=5e-2)

    print("KERNEL_OK")
</pallas_src>

<mosaic_0001>
module attributes {stable_mosaic.version = 11 : i64} {
  func.func @rwkv_block_kernel(%arg0: i32, %arg1: memref<1x8x32xf32, #tpu.memory_space<vmem>>, %arg2: memref<1x32xf32, #tpu.memory_space<vmem>>, %arg3: memref<1x32xf32, #tpu.memory_space<vmem>>, %arg4: memref<1x32xf32, #tpu.memory_space<vmem>>, %arg5: memref<1x32xf32, #tpu.memory_space<vmem>>, %arg6: memref<1x32xf32, #tpu.memory_space<vmem>>, %arg7: memref<32x32xbf16, #tpu.memory_space<vmem>>, %arg8: memref<32x32xbf16, #tpu.memory_space<vmem>>, %arg9: memref<32x32xbf16, #tpu.memory_space<vmem>>, %arg10: memref<32x32xbf16, #tpu.memory_space<vmem>>, %arg11: memref<4x8x8xf32, #tpu.memory_space<vmem>>, %arg12: memref<4x8x1xf32, #tpu.memory_space<vmem>>, %arg13: memref<4x8x1xf32, #tpu.memory_space<vmem>>, %arg14: memref<4x1x1xf32, #tpu.memory_space<vmem>>, %arg15: memref<4x1x8xf32, #tpu.memory_space<vmem>>, %arg16: memref<4x1x8xf32, #tpu.memory_space<vmem>>, %arg17: memref<32x32xbf16, #tpu.memory_space<vmem>>, %arg18: memref<1x32xf32, #tpu.memory_space<vmem>>, %arg19: memref<1x32xf32, #tpu.memory_space<vmem>>, %arg20: memref<1x32xf32, #tpu.memory_space<vmem>>, %arg21: memref<32x96xbf16, #tpu.memory_space<vmem>>, %arg22: memref<96x32xbf16, #tpu.memory_space<vmem>>, %arg23: memref<32x32xbf16, #tpu.memory_space<vmem>>, %arg24: memref<1x8x32xf32, #tpu.memory_space<vmem>>, %arg25: memref<8x32xbf16, #tpu.memory_space<vmem>>) attributes {dimension_semantics = [#tpu.dimension_semantics<parallel>], iteration_bounds = array<i64: 2>, scalar_prefetch = 0 : i64, scratch_operands = 1 : i64, tpu.core_type = #tpu.core_type<tc>, window_params = [{transform_indices = @transform_0, window_bounds = array<i64: 1, 8, 32>}, {pipeline_mode = #tpu.pipeline_mode<synchronous>, transform_indices = @transform_1, window_bounds = array<i64: 1, 32>}, {pipeline_mode = #tpu.pipeline_mode<synchronous>, transform_indices = @transform_2, window_bounds = array<i64: 1, 32>}, {pipeline_mode = #tpu.pipeline_mode<synchronous>, transform_indices = @transform_3, window_bounds = array<i64: 1, 32>}, {pipeline_mode = #tpu.pipeline_mode<synchronous>, transform_indices = @transform_4, window_bounds = array<i64: 1, 32>}, {pipeline_mode = #tpu.pipeline_mode<synchronous>, transform_indices = @transform_5, window_bounds = array<i64: 1, 32>}, {pipeline_mode = #tpu.pipeline_mode<synchronous>, transform_indices = @transform_6, window_bounds = array<i64: 32, 32>}, {pipeline_mode = #tpu.pipeline_mode<synchronous>, transform_indices = @transform_7, window_bounds = array<i64: 32, 32>}, {pipeline_mode = #tpu.pipeline_mode<synchronous>, transform_indices = @transform_8, window_bounds = array<i64: 32, 32>}, {pipeline_mode = #tpu.pipeline_mode<synchronous>, transform_indices = @transform_9, window_bounds = array<i64: 32, 32>}, {pipeline_mode = #tpu.pipeline_mode<synchronous>, transform_indices = @transform_10, window_bounds = array<i64: 4, 8, 8>}, {pipeline_mode = #tpu.pipeline_mode<synchronous>, transform_indices = @transform_11, window_bounds = array<i64: 4, 8, 1>}, {pipeline_mode = #tpu.pipeline_mode<synchronous>, transform_indices = @transform_12, window_bounds = array<i64: 4, 8, 1>}, {pipeline_mode = #tpu.pipeline_mode<synchronous>, transform_indices = @transform_13, window_bounds = array<i64: 4, 1, 1>}, {pipeline_mode = #tpu.pipeline_mode<synchronous>, transform_indices = @transform_14, window_bounds = array<i64: 4, 1, 8>}, {pipeline_mode = #tpu.pipeline_mode<synchronous>, transform_indices = @transform_15, window_bounds = array<i64: 4, 1, 8>}, {pipeline_mode = #tpu.pipeline_mode<synchronous>, transform_indices = @transform_16, window_bounds = array<i64: 32, 32>}, {pipeline_mode = #tpu.pipeline_mode<synchronous>, transform_indices = @transform_17, window_bounds = array<i64: 1, 32>}, {pipeline_mode = #tpu.pipeline_mode<synchronous>, transform_indices = @transform_18, window_bounds = array<i64: 1, 32>}, {pipeline_mode = #tpu.pipeline_mode<synchronous>, transform_indices = @transform_19, window_bounds = array<i64: 1, 32>}, {pipeline_mode = #tpu.pipeline_mode<synchronous>, transform_indices = @transform_20, window_bounds = array<i64: 32, 96>}, {pipeline_mode = #tpu.pipeline_mode<synchronous>, transform_indices = @transform_21, window_bounds = array<i64: 96, 32>}, {pipeline_mode = #tpu.pipeline_mode<synchronous>, transform_indices = @transform_22, window_bounds = array<i64: 32, 32>}, {transform_indices = @transform_23, window_bounds = array<i64: 1, 8, 32>}]} {
    %c0 = arith.constant 0 : index
    %c0_0 = arith.constant 0 : index
    %c0_1 = arith.constant 0 : index
    %0 = vector.load %arg1[%c0, %c0_0, %c0_1] : memref<1x8x32xf32, #tpu.memory_space<vmem>>, vector<1x8x32xf32>
    %1 = vector.shape_cast %0 : vector<1x8x32xf32> to vector<8x32xf32>
    %c0_2 = arith.constant 0 : index
    %c0_3 = arith.constant 0 : index
    %2 = vector.load %arg2[%c0_2, %c0_3] : memref<1x32xf32, #tpu.memory_space<vmem>>, vector<1x32xf32>
    %cst = arith.constant dense<0.000000e+00> : vector<8xf32>
    %3 = vector.multi_reduction <add>, %1, %cst [1] : vector<8x32xf32> to vector<8xf32>
    %4 = vector.shape_cast %3 : vector<8xf32> to vector<8x1xf32>
    %cst_4 = arith.constant 3.200000e+01 : f32
    %5 = vector.broadcast %cst_4 : f32 to vector<8x1xf32>
    %6 = arith.divf %4, %5 : vector<8x1xf32>
    %7 = vector.broadcast %6 : vector<8x1xf32> to vector<8x32xf32>
    %8 = arith.subf %1, %7 : vector<8x32xf32>
    %9 = arith.mulf %8, %8 : vector<8x32xf32>
    %cst_5 = arith.constant dense<0.000000e+00> : vector<8xf32>
    %10 = vector.multi_reduction <add>, %9, %cst_5 [1] : vector<8x32xf32> to vector<8xf32>
    %11 = vector.shape_cast %10 : vector<8xf32> to vector<8x1xf32>
    %cst_6 = arith.constant 3.200000e+01 : f32
    %12 = vector.broadcast %cst_6 : f32 to vector<8x1xf32>
    %13 = arith.divf %11, %12 : vector<8x1xf32>
    %14 = vector.broadcast %6 : vector<8x1xf32> to vector<8x32xf32>
    %15 = arith.subf %1, %14 : vector<8x32xf32>
    %cst_7 = arith.constant 9.99999974E-6 : f32
    %16 = vector.broadcast %cst_7 : f32 to vector<8x1xf32>
    %17 = arith.addf %13, %16 : vector<8x1xf32>
    %18 = math.rsqrt %17 : vector<8x1xf32>
    %19 = vector.broadcast %18 : vector<8x1xf32> to vector<8x32xf32>
    %20 = arith.mulf %15, %19 : vector<8x32xf32>
    %21 = vector.broadcast %2 : vector<1x32xf32> to vector<8x32xf32>
    %22 = arith.mulf %20, %21 : vector<8x32xf32>
    %c1_i32 = arith.constant 1 : i32
    %23 = tpu.dynamic_rotate %22 by %c1_i32 dim 0 : vector<8x32xf32>, i32 -> vector<8x32xf32>
    %24 = tpu.iota {dimensions = array<i32: 0>} : vector<8x32xi32>
    %c0_i32 = arith.constant 0 : i32
    %25 = vector.broadcast %c0_i32 : i32 to vector<8x32xi32>
    %26 = arith.cmpi eq, %24, %25 : vector<8x32xi32>
    %cst_8 = arith.constant 0.000000e+00 : f32
    %27 = vector.broadcast %cst_8 : f32 to vector<8x32xf32>
    %28 = arith.select %26, %27, %23 : vector<8x32xi1>, vector<8x32xf32>
    %29 = arith.subf %28, %22 : vector<8x32xf32>
    %c0_9 = arith.constant 0 : index
    %c0_10 = arith.constant 0 : index
    %30 = vector.load %arg3[%c0_9, %c0_10] : memref<1x32xf32, #tpu.memory_space<vmem>>, vector<1x32xf32>
    %31 = vector.broadcast %30 : vector<1x32xf32> to vector<8x32xf32>
    %32 = arith.mulf %29, %31 : vector<8x32xf32>
    %33 = arith.addf %22, %32 : vector<8x32xf32>
    %c0_11 = arith.constant 0 : index
    %c0_12 = arith.constant 0 : index
    %34 = vector.load %arg4[%c0_11, %c0_12] : memref<1x32xf32, #tpu.memory_space<vmem>>, vector<1x32xf32>
    %35 = vector.broadcast %34 : vector<1x32xf32> to vector<8x32xf32>
    %36 = arith.mulf %29, %35 : vector<8x32xf32>
    %37 = arith.addf %22, %36 : vector<8x32xf32>
    %c0_13 = arith.constant 0 : index
    %c0_14 = arith.constant 0 : index
    %38 = vector.load %arg5[%c0_13, %c0_14] : memref<1x32xf32, #tpu.memory_space<vmem>>, vector<1x32xf32>
    %39 = vector.broadcast %38 : vector<1x32xf32> to vector<8x32xf32>
    %40 = arith.mulf %29, %39 : vector<8x32xf32>
    %41 = arith.addf %22, %40 : vector<8x32xf32>
    %c0_15 = arith.constant 0 : index
    %c0_16 = arith.constant 0 : index
    %42 = vector.load %arg6[%c0_15, %c0_16] : memref<1x32xf32, #tpu.memory_space<vmem>>, vector<1x32xf32>
    %43 = vector.broadcast %42 : vector<1x32xf32> to vector<8x32xf32>
    %44 = arith.mulf %29, %43 : vector<8x32xf32>
    %45 = arith.addf %22, %44 : vector<8x32xf32>
    %c0_17 = arith.constant 0 : index
    %c0_18 = arith.constant 0 : index
    %46 = vector.load %arg7[%c0_17, %c0_18] : memref<32x32xbf16, #tpu.memory_space<vmem>>, vector<32x32xbf16>
    %47 = arith.truncf %41 : vector<8x32xf32> to vector<8x32xbf16>
    %cst_19 = arith.constant dense<0.000000e+00> : vector<8x32xf32>
    %48 = tpu.matmul %47, %46, %cst_19 {dimension_numbers = #tpu.dot_dimension_numbers<[1], [0], [0], [1], [0, 0, 1, 1], [], []>} : vector<8x32xbf16>, vector<32x32xbf16>, vector<8x32xf32> -> vector<8x32xf32>
    %49 = arith.truncf %48 : vector<8x32xf32> to vector<8x32xbf16>
    %c0_20 = arith.constant 0 : index
    %c0_21 = arith.constant 0 : index
    %50 = vector.load %arg8[%c0_20, %c0_21] : memref<32x32xbf16, #tpu.memory_space<vmem>>, vector<32x32xbf16>
    %51 = arith.truncf %33 : vector<8x32xf32> to vector<8x32xbf16>
    %cst_22 = arith.constant dense<0.000000e+00> : vector<8x32xf32>
    %52 = tpu.matmul %51, %50, %cst_22 {dimension_numbers = #tpu.dot_dimension_numbers<[1], [0], [0], [1], [0, 0, 1, 1], [], []>} : vector<8x32xbf16>, vector<32x32xbf16>, vector<8x32xf32> -> vector<8x32xf32>
    %53 = arith.truncf %52 : vector<8x32xf32> to vector<8x32xbf16>
    %c0_23 = arith.constant 0 : index
    %c0_24 = arith.constant 0 : index
    %54 = vector.load %arg9[%c0_23, %c0_24] : memref<32x32xbf16, #tpu.memory_space<vmem>>, vector<32x32xbf16>
    %55 = arith.truncf %37 : vector<8x32xf32> to vector<8x32xbf16>
    %cst_25 = arith.constant dense<0.000000e+00> : vector<8x32xf32>
    %56 = tpu.matmul %55, %54, %cst_25 {dimension_numbers = #tpu.dot_dimension_numbers<[1], [0], [0], [1], [0, 0, 1, 1], [], []>} : vector<8x32xbf16>, vector<32x32xbf16>, vector<8x32xf32> -> vector<8x32xf32>
    %57 = arith.truncf %56 : vector<8x32xf32> to vector<8x32xbf16>
    %c0_26 = arith.constant 0 : index
    %c0_27 = arith.constant 0 : index
    %58 = vector.load %arg10[%c0_26, %c0_27] : memref<32x32xbf16, #tpu.memory_space<vmem>>, vector<32x32xbf16>
    %59 = arith.truncf %45 : vector<8x32xf32> to vector<8x32xbf16>
    %cst_28 = arith.constant dense<0.000000e+00> : vector<8x32xf32>
    %60 = tpu.matmul %59, %58, %cst_28 {dimension_numbers = #tpu.dot_dimension_numbers<[1], [0], [0], [1], [0, 0, 1, 1], [], []>} : vector<8x32xbf16>, vector<32x32xbf16>, vector<8x32xf32> -> vector<8x32xf32>
    %61 = arith.negf %60 : vector<8x32xf32>
    %62 = math.exp %61 : vector<8x32xf32>
    %cst_29 = arith.constant 1.000000e+00 : f32
    %63 = vector.broadcast %cst_29 : f32 to vector<8x32xf32>
    %64 = arith.addf %63, %62 : vector<8x32xf32>
    %65 = arith.divf %63, %64 : vector<8x32xf32>
    %66 = arith.mulf %60, %65 : vector<8x32xf32>
    %67 = arith.truncf %66 : vector<8x32xf32> to vector<8x32xbf16>
    %68 = vector.extract_strided_slice %49 {offsets = [0, 0], sizes = [8, 8], strides = [1, 1]} : vector<8x32xbf16> to vector<8x8xbf16>
    %69 = vector.extract_strided_slice %53 {offsets = [0, 0], sizes = [8, 8], strides = [1, 1]} : vector<8x32xbf16> to vector<8x8xbf16>
    %70 = vector.extract_strided_slice %57 {offsets = [0, 0], sizes = [8, 8], strides = [1, 1]} : vector<8x32xbf16> to vector<8x8xbf16>
    %c0_30 = arith.constant 0 : index
    %c0_31 = arith.constant 0 : index
    %c0_32 = arith.constant 0 : index
    %71 = vector.load %arg11[%c0_30, %c0_31, %c0_32] : memref<4x8x8xf32, #tpu.memory_space<vmem>>, vector<1x8x8xf32>
    %72 = vector.shape_cast %71 : vector<1x8x8xf32> to vector<8x8xf32>
    %c0_33 = arith.constant 0 : index
    %c0_34 = arith.constant 0 : index
    %c0_35 = arith.constant 0 : index
    %73 = vector.load %arg13[%c0_33, %c0_34, %c0_35] : memref<4x8x1xf32, #tpu.memory_space<vmem>>, vector<1x8x1xf32>
    %74 = vector.shape_cast %73 : vector<1x8x1xf32> to vector<8x1xf32>
    %c0_36 = arith.constant 0 : index
    %c0_37 = arith.constant 0 : index
    %c0_38 = arith.constant 0 : index
    %75 = vector.load %arg15[%c0_36, %c0_37, %c0_38] : memref<4x1x8xf32, #tpu.memory_space<vmem>>, vector<1x1x8xf32>
    %76 = vector.shape_cast %75 : vector<1x1x8xf32> to vector<1x8xf32>
    %c0_39 = arith.constant 0 : index
    %c0_40 = arith.constant 0 : index
    %c0_41 = arith.constant 0 : index
    %77 = vector.load %arg16[%c0_39, %c0_40, %c0_41] : memref<4x1x8xf32, #tpu.memory_space<vmem>>, vector<1x1x8xf32>
    %78 = vector.shape_cast %77 : vector<1x1x8xf32> to vector<1x8xf32>
    %cst_42 = arith.constant 0.000000e+00 : f32
    %79 = vector.broadcast %cst_42 : f32 to vector<8x8xf32>
    %80 = tpu.transpose %69, [1, 0] : vector<8x8xbf16> -> vector<8x8xbf16>
    %cst_43 = arith.constant dense<0.000000e+00> : vector<8x8xf32>
    %81 = tpu.matmul %68, %80, %cst_43 {dimension_numbers = #tpu.dot_dimension_numbers<[1], [0], [0], [1], [0, 0, 1, 1], [], []>} : vector<8x8xbf16>, vector<8x8xbf16>, vector<8x8xf32> -> vector<8x8xf32>
    %82 = arith.mulf %81, %72 : vector<8x8xf32>
    %83 = arith.truncf %82 : vector<8x8xf32> to vector<8x8xbf16>
    %cst_44 = arith.constant dense<0.000000e+00> : vector<8x8xf32>
    %84 = tpu.matmul %83, %70, %cst_44 {dimension_numbers = #tpu.dot_dimension_numbers<[1], [0], [0], [1], [0, 0, 1, 1], [], []>} : vector<8x8xbf16>, vector<8x8xbf16>, vector<8x8xf32> -> vector<8x8xf32>
    %85 = arith.truncf %79 : vector<8x8xf32> to vector<8x8xbf16>
    %cst_45 = arith.constant dense<0.000000e+00> : vector<8x8xf32>
    %86 = tpu.matmul %68, %85, %cst_45 {dimension_numbers = #tpu.dot_dimension_numbers<[1], [0], [0], [1], [0, 0, 1, 1], [], []>} : vector<8x8xbf16>, vector<8x8xbf16>, vector<8x8xf32> -> vector<8x8xf32>
    %87 = vector.broadcast %74 : vector<8x1xf32> to vector<8x8xf32>
    %88 = arith.mulf %86, %87 : vector<8x8xf32>
    %89 = arith.addf %84, %88 : vector<8x8xf32>
    %cst_46 = arith.constant dense<0.000000e+00> : vector<8xf32>
    %90 = vector.multi_reduction <add>, %89, %cst_46 [1] : vector<8x8xf32> to vector<8xf32>
    %91 = vector.shape_cast %90 : vector<8xf32> to vector<8x1xf32>
    %cst_47 = arith.constant 8.000000e+00 : f32
    %92 = vector.broadcast %cst_47 : f32 to vector<8x1xf32>
    %93 = arith.divf %91, %92 : vector<8x1xf32>
    %94 = vector.broadcast %93 : vector<8x1xf32> to vector<8x8xf32>
    %95 = arith.subf %89, %94 : vector<8x8xf32>
    %96 = arith.mulf %95, %95 : vector<8x8xf32>
    %cst_48 = arith.constant dense<0.000000e+00> : vector<8xf32>
    %97 = vector.multi_reduction <add>, %96, %cst_48 [1] : vector<8x8xf32> to vector<8xf32>
    %98 = vector.shape_cast %97 : vector<8xf32> to vector<8x1xf32>
    %cst_49 = arith.constant 8.000000e+00 : f32
    %99 = vector.broadcast %cst_49 : f32 to vector<8x1xf32>
    %100 = arith.divf %98, %99 : vector<8x1xf32>
    %101 = vector.broadcast %93 : vector<8x1xf32> to vector<8x8xf32>
    %102 = arith.subf %89, %101 : vector<8x8xf32>
    %cst_50 = arith.constant 6.400000e-04 : f32
    %103 = vector.broadcast %cst_50 : f32 to vector<8x1xf32>
    %104 = arith.addf %100, %103 : vector<8x1xf32>
    %105 = math.rsqrt %104 : vector<8x1xf32>
    %106 = vector.broadcast %105 : vector<8x1xf32> to vector<8x8xf32>
    %107 = arith.mulf %102, %106 : vector<8x8xf32>
    %108 = vector.broadcast %76 : vector<1x8xf32> to vector<8x8xf32>
    %109 = arith.mulf %107, %108 : vector<8x8xf32>
    %110 = vector.broadcast %78 : vector<1x8xf32> to vector<8x8xf32>
    %111 = arith.addf %109, %110 : vector<8x8xf32>
    %112 = vector.extract_strided_slice %67 {offsets = [0, 0], sizes = [8, 8], strides = [1, 1]} : vector<8x32xbf16> to vector<8x8xbf16>
    %113 = arith.extf %112 : vector<8x8xbf16> to vector<8x8xf32>
    %114 = arith.mulf %111, %113 : vector<8x8xf32>
    %115 = arith.truncf %114 : vector<8x8xf32> to vector<8x8xbf16>
    %c0_51 = arith.constant 0 : index
    %c0_52 = arith.constant 0 : index
    %116 = vector.load %arg25[%c0_51, %c0_52] : memref<8x32xbf16, #tpu.memory_space<vmem>>, vector<8x8xbf16>
    tpu.vector_store %arg25[%c0_51, %c0_52], %115 {strides = array<i32>} : memref<8x32xbf16, #tpu.memory_space<vmem>>, vector<8x8xbf16>,
    %117 = vector.extract_strided_slice %49 {offsets = [0, 8], sizes = [8, 8], strides = [1, 1]} : vector<8x32xbf16> to vector<8x8xbf16>
    %118 = vector.extract_strided_slice %53 {offsets = [0, 8], sizes = [8, 8], strides = [1, 1]} : vector<8x32xbf16> to vector<8x8xbf16>
    %119 = vector.extract_strided_slice %57 {offsets = [0, 8], sizes = [8, 8], strides = [1, 1]} : vector<8x32xbf16> to vector<8x8xbf16>
    %c1 = arith.constant 1 : index
    %c0_53 = arith.constant 0 : index
    %c0_54 = arith.constant 0 : index
    %120 = vector.load %arg11[%c1, %c0_53, %c0_54] : memref<4x8x8xf32, #tpu.memory_space<vmem>>, vector<1x8x8xf32>
    %121 = vector.shape_cast %120 : vector<1x8x8xf32> to vector<8x8xf32>
    %c1_55 = arith.constant 1 : index
    %c0_56 = arith.constant 0 : index
    %c0_57 = arith.constant 0 : index
    %122 = vector.load %arg13[%c1_55, %c0_56, %c0_57] : memref<4x8x1xf32, #tpu.memory_space<vmem>>, vector<1x8x1xf32>
    %123 = vector.shape_cast %122 : vector<1x8x1xf32> to vector<8x1xf32>
    %c1_58 = arith.constant 1 : index
    %c0_59 = arith.constant 0 : index
    %c0_60 = arith.constant 0 : index
    %124 = vector.load %arg15[%c1_58, %c0_59, %c0_60] : memref<4x1x8xf32, #tpu.memory_space<vmem>>, vector<1x1x8xf32>
    %125 = vector.shape_cast %124 : vector<1x1x8xf32> to vector<1x8xf32>
    %c1_61 = arith.constant 1 : index
    %c0_62 = arith.constant 0 : index
    %c0_63 = arith.constant 0 : index
    %126 = vector.load %arg16[%c1_61, %c0_62, %c0_63] : memref<4x1x8xf32, #tpu.memory_space<vmem>>, vector<1x1x8xf32>
    %127 = vector.shape_cast %126 : vector<1x1x8xf32> to vector<1x8xf32>
    %cst_64 = arith.constant 0.000000e+00 : f32
    %128 = vector.broadcast %cst_64 : f32 to vector<8x8xf32>
    %129 = tpu.transpose %118, [1, 0] : vector<8x8xbf16> -> vector<8x8xbf16>
    %cst_65 = arith.constant dense<0.000000e+00> : vector<8x8xf32>
    %130 = tpu.matmul %117, %129, %cst_65 {dimension_numbers = #tpu.dot_dimension_numbers<[1], [0], [0], [1], [0, 0, 1, 1], [], []>} : vector<8x8xbf16>, vector<8x8xbf16>, vector<8x8xf32> -> vector<8x8xf32>
    %131 = arith.mulf %130, %121 : vector<8x8xf32>
    %132 = arith.truncf %131 : vector<8x8xf32> to vector<8x8xbf16>
    %cst_66 = arith.constant dense<0.000000e+00> : vector<8x8xf32>
    %133 = tpu.matmul %132, %119, %cst_66 {dimension_numbers = #tpu.dot_dimension_numbers<[1], [0], [0], [1], [0, 0, 1, 1], [], []>} : vector<8x8xbf16>, vector<8x8xbf16>, vector<8x8xf32> -> vector<8x8xf32>
    %134 = arith.truncf %128 : vector<8x8xf32> to vector<8x8xbf16>
    %cst_67 = arith.constant dense<0.000000e+00> : vector<8x8xf32>
    %135 = tpu.matmul %117, %134, %cst_67 {dimension_numbers = #tpu.dot_dimension_numbers<[1], [0], [0], [1], [0, 0, 1, 1], [], []>} : vector<8x8xbf16>, vector<8x8xbf16>, vector<8x8xf32> -> vector<8x8xf32>
    %136 = vector.broadcast %123 : vector<8x1xf32> to vector<8x8xf32>
    %137 = arith.mulf %135, %136 : vector<8x8xf32>
    %138 = arith.addf %133, %137 : vector<8x8xf32>
    %cst_68 = arith.constant dense<0.000000e+00> : vector<8xf32>
    %139 = vector.multi_reduction <add>, %138, %cst_68 [1] : vector<8x8xf32> to vector<8xf32>
    %140 = vector.shape_cast %139 : vector<8xf32> to vector<8x1xf32>
    %cst_69 = arith.constant 8.000000e+00 : f32
    %141 = vector.broadcast %cst_69 : f32 to vector<8x1xf32>
    %142 = arith.divf %140, %141 : vector<8x1xf32>
    %143 = vector.broadcast %142 : vector<8x1xf32> to vector<8x8xf32>
    %144 = arith.subf %138, %143 : vector<8x8xf32>
    %145 = arith.mulf %144, %144 : vector<8x8xf32>
    %cst_70 = arith.constant dense<0.000000e+00> : vector<8xf32>
    %146 = vector.multi_reduction <add>, %145, %cst_70 [1] : vector<8x8xf32> to vector<8xf32>
    %147 = vector.shape_cast %146 : vector<8xf32> to vector<8x1xf32>
    %cst_71 = arith.constant 8.000000e+00 : f32
    %148 = vector.broadcast %cst_71 : f32 to vector<8x1xf32>
    %149 = arith.divf %147, %148 : vector<8x1xf32>
    %150 = vector.broadcast %142 : vector<8x1xf32> to vector<8x8xf32>
    %151 = arith.subf %138, %150 : vector<8x8xf32>
    %cst_72 = arith.constant 6.400000e-04 : f32
    %152 = vector.broadcast %cst_72 : f32 to vector<8x1xf32>
    %153 = arith.addf %149, %152 : vector<8x1xf32>
    %154 = math.rsqrt %153 : vector<8x1xf32>
    %155 = vector.broadcast %154 : vector<8x1xf32> to vector<8x8xf32>
    %156 = arith.mulf %151, %155 : vector<8x8xf32>
    %157 = vector.broadcast %125 : vector<1x8xf32> to vector<8x8xf32>
    %158 = arith.mulf %156, %157 : vector<8x8xf32>
    %159 = vector.broadcast %127 : vector<1x8xf32> to vector<8x8xf32>
    %160 = arith.addf %158, %159 : vector<8x8xf32>
    %161 = vector.extract_strided_slice %67 {offsets = [0, 8], sizes = [8, 8], strides = [1, 1]} : vector<8x32xbf16> to vector<8x8xbf16>
    %162 = arith.extf %161 : vector<8x8xbf16> to vector<8x8xf32>
    %163 = arith.mulf %160, %162 : vector<8x8xf32>
    %164 = arith.truncf %163 : vector<8x8xf32> to vector<8x8xbf16>
    %c0_73 = arith.constant 0 : index
    %c8 = arith.constant 8 : index
    %165 = vector.load %arg25[%c0_73, %c8] : memref<8x32xbf16, #tpu.memory_space<vmem>>, vector<8x8xbf16>
    tpu.vector_store %arg25[%c0_73, %c8], %164 {strides = array<i32>} : memref<8x32xbf16, #tpu.memory_space<vmem>>, vector<8x8xbf16>,
    %166 = vector.extract_strided_slice %49 {offsets = [0, 16], sizes = [8, 8], strides = [1, 1]} : vector<8x32xbf16> to vector<8x8xbf16>
    %167 = vector.extract_strided_slice %53 {offsets = [0, 16], sizes = [8, 8], strides = [1, 1]} : vector<8x32xbf16> to vector<8x8xbf16>
    %168 = vector.extract_strided_slice %57 {offsets = [0, 16], sizes = [8, 8], strides = [1, 1]} : vector<8x32xbf16> to vector<8x8xbf16>
    %c2 = arith.constant 2 : index
    %c0_74 = arith.constant 0 : index
    %c0_75 = arith.constant 0 : index
    %169 = vector.load %arg11[%c2, %c0_74, %c0_75] : memref<4x8x8xf32, #tpu.memory_space<vmem>>, vector<1x8x8xf32>
    %170 = vector.shape_cast %169 : vector<1x8x8xf32> to vector<8x8xf32>
    %c2_76 = arith.constant 2 : index
    %c0_77 = arith.constant 0 : index
    %c0_78 = arith.constant 0 : index
    %171 = vector.load %arg13[%c2_76, %c0_77, %c0_78] : memref<4x8x1xf32, #tpu.memory_space<vmem>>, vector<1x8x1xf32>
    %172 = vector.shape_cast %171 : vector<1x8x1xf32> to vector<8x1xf32>
    %c2_79 = arith.constant 2 : index
    %c0_80 = arith.constant 0 : index
    %c0_81 = arith.constant 0 : index
    %173 = vector.load %arg15[%c2_79, %c0_80, %c0_81] : memref<4x1x8xf32, #tpu.memory_space<vmem>>, vector<1x1x8xf32>
    %174 = vector.shape_cast %173 : vector<1x1x8xf32> to vector<1x8xf32>
    %c2_82 = arith.constant 2 : index
    %c0_83 = arith.constant 0 : index
    %c0_84 = arith.constant 0 : index
    %175 = vector.load %arg16[%c2_82, %c0_83, %c0_84] : memref<4x1x8xf32, #tpu.memory_space<vmem>>, vector<1x1x8xf32>
    %176 = vector.shape_cast %175 : vector<1x1x8xf32> to vector<1x8xf32>
    %cst_85 = arith.constant 0.000000e+00 : f32
    %177 = vector.broadcast %cst_85 : f32 to vector<8x8xf32>
    %178 = tpu.transpose %167, [1, 0] : vector<8x8xbf16> -> vector<8x8xbf16>
    %cst_86 = arith.constant dense<0.000000e+00> : vector<8x8xf32>
    %179 = tpu.matmul %166, %178, %cst_86 {dimension_numbers = #tpu.dot_dimension_numbers<[1], [0], [0], [1], [0, 0, 1, 1], [], []>} : vector<8x8xbf16>, vector<8x8xbf16>, vector<8x8xf32> -> vector<8x8xf32>
    %180 = arith.mulf %179, %170 : vector<8x8xf32>
    %181 = arith.truncf %180 : vector<8x8xf32> to vector<8x8xbf16>
    %cst_87 = arith.constant dense<0.000000e+00> : vector<8x8xf32>
    %182 = tpu.matmul %181, %168, %cst_87 {dimension_numbers = #tpu.dot_dimension_numbers<[1], [0], [0], [1], [0, 0, 1, 1], [], []>} : vector<8x8xbf16>, vector<8x8xbf16>, vector<8x8xf32> -> vector<8x8xf32>
    %183 = arith.truncf %177 : vector<8x8xf32> to vector<8x8xbf16>
    %cst_88 = arith.constant dense<0.000000e+00> : vector<8x8xf32>
    %184 = tpu.matmul %166, %183, %cst_88 {dimension_numbers = #tpu.dot_dimension_numbers<[1], [0], [0], [1], [0, 0, 1, 1], [], []>} : vector<8x8xbf16>, vector<8x8xbf16>, vector<8x8xf32> -> vector<8x8xf32>
    %185 = vector.broadcast %172 : vector<8x1xf32> to vector<8x8xf32>
    %186 = arith.mulf %184, %185 : vector<8x8xf32>
    %187 = arith.addf %182, %186 : vector<8x8xf32>
    %cst_89 = arith.constant dense<0.000000e+00> : vector<8xf32>
    %188 = vector.multi_reduction <add>, %187, %cst_89 [1] : vector<8x8xf32> to vector<8xf32>
    %189 = vector.shape_cast %188 : vector<8xf32> to vector<8x1xf32>
    %cst_90 = arith.constant 8.000000e+00 : f32
    %190 = vector.broadcast %cst_90 : f32 to vector<8x1xf32>
    %191 = arith.divf %189, %190 : vector<8x1xf32>
    %192 = vector.broadcast %191 : vector<8x1xf32> to vector<8x8xf32>
    %193 = arith.subf %187, %192 : vector<8x8xf32>
    %194 = arith.mulf %193, %193 : vector<8x8xf32>
    %cst_91 = arith.constant dense<0.000000e+00> : vector<8xf32>
    %195 = vector.multi_reduction <add>, %194, %cst_91 [1] : vector<8x8xf32> to vector<8xf32>
    %196 = vector.shape_cast %195 : vector<8xf32> to vector<8x1xf32>
    %cst_92 = arith.constant 8.000000e+00 : f32
    %197 = vector.broadcast %cst_92 : f32 to vector<8x1xf32>
    %198 = arith.divf %196, %197 : vector<8x1xf32>
    %199 = vector.broadcast %191 : vector<8x1xf32> to vector<8x8xf32>
    %200 = arith.subf %187, %199 : vector<8x8xf32>
    %cst_93 = arith.constant 6.400000e-04 : f32
    %201 = vector.broadcast %cst_93 : f32 to vector<8x1xf32>
    %202 = arith.addf %198, %201 : vector<8x1xf32>
    %203 = math.rsqrt %202 : vector<8x1xf32>
    %204 = vector.broadcast %203 : vector<8x1xf32> to vector<8x8xf32>
    %205 = arith.mulf %200, %204 : vector<8x8xf32>
    %206 = vector.broadcast %174 : vector<1x8xf32> to vector<8x8xf32>
    %207 = arith.mulf %205, %206 : vector<8x8xf32>
    %208 = vector.broadcast %176 : vector<1x8xf32> to vector<8x8xf32>
    %209 = arith.addf %207, %208 : vector<8x8xf32>
    %210 = vector.extract_strided_slice %67 {offsets = [0, 16], sizes = [8, 8], strides = [1, 1]} : vector<8x32xbf16> to vector<8x8xbf16>
    %211 = arith.extf %210 : vector<8x8xbf16> to vector<8x8xf32>
    %212 = arith.mulf %209, %211 : vector<8x8xf32>
    %213 = arith.truncf %212 : vector<8x8xf32> to vector<8x8xbf16>
    %c0_94 = arith.constant 0 : index
    %c16 = arith.constant 16 : index
    %214 = vector.load %arg25[%c0_94, %c16] : memref<8x32xbf16, #tpu.memory_space<vmem>>, vector<8x8xbf16>
    tpu.vector_store %arg25[%c0_94, %c16], %213 {strides = array<i32>} : memref<8x32xbf16, #tpu.memory_space<vmem>>, vector<8x8xbf16>,
    %215 = vector.extract_strided_slice %49 {offsets = [0, 24], sizes = [8, 8], strides = [1, 1]} : vector<8x32xbf16> to vector<8x8xbf16>
    %216 = vector.extract_strided_slice %53 {offsets = [0, 24], sizes = [8, 8], strides = [1, 1]} : vector<8x32xbf16> to vector<8x8xbf16>
    %217 = vector.extract_strided_slice %57 {offsets = [0, 24], sizes = [8, 8], strides = [1, 1]} : vector<8x32xbf16> to vector<8x8xbf16>
    %c3 = arith.constant 3 : index
    %c0_95 = arith.constant 0 : index
    %c0_96 = arith.constant 0 : index
    %218 = vector.load %arg11[%c3, %c0_95, %c0_96] : memref<4x8x8xf32, #tpu.memory_space<vmem>>, vector<1x8x8xf32>
    %219 = vector.shape_cast %218 : vector<1x8x8xf32> to vector<8x8xf32>
    %c3_97 = arith.constant 3 : index
    %c0_98 = arith.constant 0 : index
    %c0_99 = arith.constant 0 : index
    %220 = vector.load %arg13[%c3_97, %c0_98, %c0_99] : memref<4x8x1xf32, #tpu.memory_space<vmem>>, vector<1x8x1xf32>
    %221 = vector.shape_cast %220 : vector<1x8x1xf32> to vector<8x1xf32>
    %c3_100 = arith.constant 3 : index
    %c0_101 = arith.constant 0 : index
    %c0_102 = arith.constant 0 : index
    %222 = vector.load %arg15[%c3_100, %c0_101, %c0_102] : memref<4x1x8xf32, #tpu.memory_space<vmem>>, vector<1x1x8xf32>
    %223 = vector.shape_cast %222 : vector<1x1x8xf32> to vector<1x8xf32>
    %c3_103 = arith.constant 3 : index
    %c0_104 = arith.constant 0 : index
    %c0_105 = arith.constant 0 : index
    %224 = vector.load %arg16[%c3_103, %c0_104, %c0_105] : memref<4x1x8xf32, #tpu.memory_space<vmem>>, vector<1x1x8xf32>
    %225 = vector.shape_cast %224 : vector<1x1x8xf32> to vector<1x8xf32>
    %cst_106 = arith.constant 0.000000e+00 : f32
    %226 = vector.broadcast %cst_106 : f32 to vector<8x8xf32>
    %227 = tpu.transpose %216, [1, 0] : vector<8x8xbf16> -> vector<8x8xbf16>
    %cst_107 = arith.constant dense<0.000000e+00> : vector<8x8xf32>
    %228 = tpu.matmul %215, %227, %cst_107 {dimension_numbers = #tpu.dot_dimension_numbers<[1], [0], [0], [1], [0, 0, 1, 1], [], []>} : vector<8x8xbf16>, vector<8x8xbf16>, vector<8x8xf32> -> vector<8x8xf32>
    %229 = arith.mulf %228, %219 : vector<8x8xf32>
    %230 = arith.truncf %229 : vector<8x8xf32> to vector<8x8xbf16>
    %cst_108 = arith.constant dense<0.000000e+00> : vector<8x8xf32>
    %231 = tpu.matmul %230, %217, %cst_108 {dimension_numbers = #tpu.dot_dimension_numbers<[1], [0], [0], [1], [0, 0, 1, 1], [], []>} : vector<8x8xbf16>, vector<8x8xbf16>, vector<8x8xf32> -> vector<8x8xf32>
    %232 = arith.truncf %226 : vector<8x8xf32> to vector<8x8xbf16>
    %cst_109 = arith.constant dense<0.000000e+00> : vector<8x8xf32>
    %233 = tpu.matmul %215, %232, %cst_109 {dimension_numbers = #tpu.dot_dimension_numbers<[1], [0], [0], [1], [0, 0, 1, 1], [], []>} : vector<8x8xbf16>, vector<8x8xbf16>, vector<8x8xf32> -> vector<8x8xf32>
    %234 = vector.broadcast %221 : vector<8x1xf32> to vector<8x8xf32>
    %235 = arith.mulf %233, %234 : vector<8x8xf32>
    %236 = arith.addf %231, %235 : vector<8x8xf32>
    %cst_110 = arith.constant dense<0.000000e+00> : vector<8xf32>
    %237 = vector.multi_reduction <add>, %236, %cst_110 [1] : vector<8x8xf32> to vector<8xf32>
    %238 = vector.shape_cast %237 : vector<8xf32> to vector<8x1xf32>
    %cst_111 = arith.constant 8.000000e+00 : f32
    %239 = vector.broadcast %cst_111 : f32 to vector<8x1xf32>
    %240 = arith.divf %238, %239 : vector<8x1xf32>
    %241 = vector.broadcast %240 : vector<8x1xf32> to vector<8x8xf32>
    %242 = arith.subf %236, %241 : vector<8x8xf32>
    %243 = arith.mulf %242, %242 : vector<8x8xf32>
    %cst_112 = arith.constant dense<0.000000e+00> : vector<8xf32>
    %244 = vector.multi_reduction <add>, %243, %cst_112 [1] : vector<8x8xf32> to vector<8xf32>
    %245 = vector.shape_cast %244 : vector<8xf32> to vector<8x1xf32>
    %cst_113 = arith.constant 8.000000e+00 : f32
    %246 = vector.broadcast %cst_113 : f32 to vector<8x1xf32>
    %247 = arith.divf %245, %246 : vector<8x1xf32>
    %248 = vector.broadcast %240 : vector<8x1xf32> to vector<8x8xf32>
    %249 = arith.subf %236, %248 : vector<8x8xf32>
    %cst_114 = arith.constant 6.400000e-04 : f32
    %250 = vector.broadcast %cst_114 : f32 to vector<8x1xf32>
    %251 = arith.addf %247, %250 : vector<8x1xf32>
    %252 = math.rsqrt %251 : vector<8x1xf32>
    %253 = vector.broadcast %252 : vector<8x1xf32> to vector<8x8xf32>
    %254 = arith.mulf %249, %253 : vector<8x8xf32>
    %255 = vector.broadcast %223 : vector<1x8xf32> to vector<8x8xf32>
    %256 = arith.mulf %254, %255 : vector<8x8xf32>
    %257 = vector.broadcast %225 : vector<1x8xf32> to vector<8x8xf32>
    %258 = arith.addf %256, %257 : vector<8x8xf32>
    %259 = vector.extract_strided_slice %67 {offsets = [0, 24], sizes = [8, 8], strides = [1, 1]} : vector<8x32xbf16> to vector<8x8xbf16>
    %260 = arith.extf %259 : vector<8x8xbf16> to vector<8x8xf32>
    %261 = arith.mulf %258, %260 : vector<8x8xf32>
    %262 = arith.truncf %261 : vector<8x8xf32> to vector<8x8xbf16>
    %c0_115 = arith.constant 0 : index
    %c24 = arith.constant 24 : index
    %263 = vector.load %arg25[%c0_115, %c24] : memref<8x32xbf16, #tpu.memory_space<vmem>>, vector<8x8xbf16>
    tpu.vector_store %arg25[%c0_115, %c24], %262 {strides = array<i32>} : memref<8x32xbf16, #tpu.memory_space<vmem>>, vector<8x8xbf16>,
    %c0_116 = arith.constant 0 : index
    %c0_117 = arith.constant 0 : index
    %264 = vector.load %arg25[%c0_116, %c0_117] : memref<8x32xbf16, #tpu.memory_space<vmem>>, vector<8x32xbf16>
    %c0_118 = arith.constant 0 : index
    %c0_119 = arith.constant 0 : index
    %265 = vector.load %arg17[%c0_118, %c0_119] : memref<32x32xbf16, #tpu.memory_space<vmem>>, vector<32x32xbf16>
    %cst_120 = arith.constant dense<0.000000e+00> : vector<8x32xf32>
    %266 = tpu.matmul %264, %265, %cst_120 {dimension_numbers = #tpu.dot_dimension_numbers<[1], [0], [0], [1], [0, 0, 1, 1], [], []>} : vector<8x32xbf16>, vector<32x32xbf16>, vector<8x32xf32> -> vector<8x32xf32>
    %267 = arith.addf %1, %266 : vector<8x32xf32>
    %c0_121 = arith.constant 0 : index
    %c0_122 = arith.constant 0 : index
    %268 = vector.load %arg18[%c0_121, %c0_122] : memref<1x32xf32, #tpu.memory_space<vmem>>, vector<1x32xf32>
    %cst_123 = arith.constant dense<0.000000e+00> : vector<8xf32>
    %269 = vector.multi_reduction <add>, %267, %cst_123 [1] : vector<8x32xf32> to vector<8xf32>
    %270 = vector.shape_cast %269 : vector<8xf32> to vector<8x1xf32>
    %cst_124 = arith.constant 3.200000e+01 : f32
    %271 = vector.broadcast %cst_124 : f32 to vector<8x1xf32>
    %272 = arith.divf %270, %271 : vector<8x1xf32>
    %273 = vector.broadcast %272 : vector<8x1xf32> to vector<8x32xf32>
    %274 = arith.subf %267, %273 : vector<8x32xf32>
    %275 = arith.mulf %274, %274 : vector<8x32xf32>
    %cst_125 = arith.constant dense<0.000000e+00> : vector<8xf32>
    %276 = vector.multi_reduction <add>, %275, %cst_125 [1] : vector<8x32xf32> to vector<8xf32>
    %277 = vector.shape_cast %276 : vector<8xf32> to vector<8x1xf32>
    %cst_126 = arith.constant 3.200000e+01 : f32
    %278 = vector.broadcast %cst_126 : f32 to vector<8x1xf32>
    %279 = arith.divf %277, %278 : vector<8x1xf32>
    %280 = vector.broadcast %272 : vector<8x1xf32> to vector<8x32xf32>
    %281 = arith.subf %267, %280 : vector<8x32xf32>
    %cst_127 = arith.constant 9.99999974E-6 : f32
    %282 = vector.broadcast %cst_127 : f32 to vector<8x1xf32>
    %283 = arith.addf %279, %282 : vector<8x1xf32>
    %284 = math.rsqrt %283 : vector<8x1xf32>
    %285 = vector.broadcast %284 : vector<8x1xf32> to vector<8x32xf32>
    %286 = arith.mulf %281, %285 : vector<8x32xf32>
    %287 = vector.broadcast %268 : vector<1x32xf32> to vector<8x32xf32>
    %288 = arith.mulf %286, %287 : vector<8x32xf32>
    %c1_i32_128 = arith.constant 1 : i32
    %289 = tpu.dynamic_rotate %288 by %c1_i32_128 dim 0 : vector<8x32xf32>, i32 -> vector<8x32xf32>
    %290 = tpu.iota {dimensions = array<i32: 0>} : vector<8x32xi32>
    %c0_i32_129 = arith.constant 0 : i32
    %291 = vector.broadcast %c0_i32_129 : i32 to vector<8x32xi32>
    %292 = arith.cmpi eq, %290, %291 : vector<8x32xi32>
    %cst_130 = arith.constant 0.000000e+00 : f32
    %293 = vector.broadcast %cst_130 : f32 to vector<8x32xf32>
    %294 = arith.select %292, %293, %289 : vector<8x32xi1>, vector<8x32xf32>
    %295 = arith.subf %294, %288 : vector<8x32xf32>
    %c0_131 = arith.constant 0 : index
    %c0_132 = arith.constant 0 : index
    %296 = vector.load %arg19[%c0_131, %c0_132] : memref<1x32xf32, #tpu.memory_space<vmem>>, vector<1x32xf32>
    %297 = vector.broadcast %296 : vector<1x32xf32> to vector<8x32xf32>
    %298 = arith.mulf %295, %297 : vector<8x32xf32>
    %299 = arith.addf %288, %298 : vector<8x32xf32>
    %300 = arith.truncf %299 : vector<8x32xf32> to vector<8x32xbf16>
    %c0_133 = arith.constant 0 : index
    %c0_134 = arith.constant 0 : index
    %301 = vector.load %arg20[%c0_133, %c0_134] : memref<1x32xf32, #tpu.memory_space<vmem>>, vector<1x32xf32>
    %302 = vector.broadcast %301 : vector<1x32xf32> to vector<8x32xf32>
    %303 = arith.mulf %295, %302 : vector<8x32xf32>
    %304 = arith.addf %288, %303 : vector<8x32xf32>
    %cst_135 = arith.constant 0.000000e+00 : f32
    %305 = vector.broadcast %cst_135 : f32 to vector<8x32xf32>
    %c0_136 = arith.constant 0 : index
    %c0_137 = arith.constant 0 : index
    %306 = vector.load %arg21[%c0_136, %c0_137] : memref<32x96xbf16, #tpu.memory_space<vmem>>, vector<32x96xbf16>
    %cst_138 = arith.constant dense<0.000000e+00> : vector<8x96xf32>
    %307 = tpu.matmul %300, %306, %cst_138 {dimension_numbers = #tpu.dot_dimension_numbers<[1], [0], [0], [1], [0, 0, 1, 1], [], []>} : vector<8x32xbf16>, vector<32x96xbf16>, vector<8x96xf32> -> vector<8x96xf32>
    %cst_139 = arith.constant 0.000000e+00 : f32
    %308 = vector.broadcast %cst_139 : f32 to vector<8x96xf32>
    %309 = arith.maximumf %307, %308 : vector<8x96xf32>
    %310 = arith.mulf %309, %309 : vector<8x96xf32>
    %311 = arith.truncf %310 : vector<8x96xf32> to vector<8x96xbf16>
    %c0_140 = arith.constant 0 : index
    %c0_141 = arith.constant 0 : index
    %312 = vector.load %arg22[%c0_140, %c0_141] : memref<96x32xbf16, #tpu.memory_space<vmem>>, vector<96x32xbf16>
    %cst_142 = arith.constant dense<0.000000e+00> : vector<8x32xf32>
    %313 = tpu.matmul %311, %312, %cst_142 {dimension_numbers = #tpu.dot_dimension_numbers<[1], [0], [0], [1], [0, 0, 1, 1], [], []>} : vector<8x96xbf16>, vector<96x32xbf16>, vector<8x32xf32> -> vector<8x32xf32>
    %314 = arith.addf %305, %313 : vector<8x32xf32>
    %c0_143 = arith.constant 0 : index
    %c0_144 = arith.constant 0 : index
    %315 = vector.load %arg23[%c0_143, %c0_144] : memref<32x32xbf16, #tpu.memory_space<vmem>>, vector<32x32xbf16>
    %316 = arith.truncf %304 : vector<8x32xf32> to vector<8x32xbf16>
    %cst_145 = arith.constant dense<0.000000e+00> : vector<8x32xf32>
    %317 = tpu.matmul %316, %315, %cst_145 {dimension_numbers = #tpu.dot_dimension_numbers<[1], [0], [0], [1], [0, 0, 1, 1], [], []>} : vector<8x32xbf16>, vector<32x32xbf16>, vector<8x32xf32> -> vector<8x32xf32>
    %318 = arith.negf %317 : vector<8x32xf32>
    %319 = math.exp %318 : vector<8x32xf32>
    %cst_146 = arith.constant 1.000000e+00 : f32
    %320 = vector.broadcast %cst_146 : f32 to vector<8x32xf32>
    %321 = arith.addf %320, %319 : vector<8x32xf32>
    %322 = arith.divf %320, %321 : vector<8x32xf32>
    %323 = arith.mulf %322, %314 : vector<8x32xf32>
    %324 = arith.addf %267, %323 : vector<8x32xf32>
    %c0_147 = arith.constant 0 : index
    %c0_148 = arith.constant 0 : index
    %c0_149 = arith.constant 0 : index
    %325 = vector.load %arg24[%c0_147, %c0_148, %c0_149] : memref<1x8x32xf32, #tpu.memory_space<vmem>>, vector<1x8x32xf32>
    %326 = vector.shape_cast %325 : vector<1x8x32xf32> to vector<8x32xf32>
    %327 = vector.shape_cast %324 : vector<8x32xf32> to vector<1x8x32xf32>
    tpu.vector_store %arg24[%c0_147, %c0_148, %c0_149], %327 {strides = array<i32>} : memref<1x8x32xf32, #tpu.memory_space<vmem>>, vector<1x8x32xf32>,
    return
  }
  func.func @transform_0(%arg0: i32) -> (i32, i32, i32) {
    %c0_i32 = arith.constant 0 : i32
    %c0_i32_0 = arith.constant 0 : i32
    %c0_i32_1 = arith.constant 0 : i32
    return %arg0, %c0_i32, %c0_i32_0 : i32, i32, i32
  }
  func.func @transform_1(%arg0: i32) -> (i32, i32) {
    %c0_i32 = arith.constant 0 : i32
    %c0_i32_0 = arith.constant 0 : i32
    %c0_i32_1 = arith.constant 0 : i32
    return %c0_i32, %c0_i32_0 : i32, i32
  }
  func.func @transform_2(%arg0: i32) -> (i32, i32) {
    %c0_i32 = arith.constant 0 : i32
    %c0_i32_0 = arith.constant 0 : i32
    %c0_i32_1 = arith.constant 0 : i32
    return %c0_i32, %c0_i32_0 : i32, i32
  }
  func.func @transform_3(%arg0: i32) -> (i32, i32) {
    %c0_i32 = arith.constant 0 : i32
    %c0_i32_0 = arith.constant 0 : i32
    %c0_i32_1 = arith.constant 0 : i32
    return %c0_i32, %c0_i32_0 : i32, i32
  }
  func.func @transform_4(%arg0: i32) -> (i32, i32) {
    %c0_i32 = arith.constant 0 : i32
    %c0_i32_0 = arith.constant 0 : i32
    %c0_i32_1 = arith.constant 0 : i32
    return %c0_i32, %c0_i32_0 : i32, i32
  }
  func.func @transform_5(%arg0: i32) -> (i32, i32) {
    %c0_i32 = arith.constant 0 : i32
    %c0_i32_0 = arith.constant 0 : i32
    %c0_i32_1 = arith.constant 0 : i32
    return %c0_i32, %c0_i32_0 : i32, i32
  }
  func.func @transform_6(%arg0: i32) -> (i32, i32) {
    %c0_i32 = arith.constant 0 : i32
    %c0_i32_0 = arith.constant 0 : i32
    %c0_i32_1 = arith.constant 0 : i32
    return %c0_i32, %c0_i32_0 : i32, i32
  }
  func.func @transform_7(%arg0: i32) -> (i32, i32) {
    %c0_i32 = arith.constant 0 : i32
    %c0_i32_0 = arith.constant 0 : i32
    %c0_i32_1 = arith.constant 0 : i32
    return %c0_i32, %c0_i32_0 : i32, i32
  }
  func.func @transform_8(%arg0: i32) -> (i32, i32) {
    %c0_i32 = arith.constant 0 : i32
    %c0_i32_0 = arith.constant 0 : i32
    %c0_i32_1 = arith.constant 0 : i32
    return %c0_i32, %c0_i32_0 : i32, i32
  }
  func.func @transform_9(%arg0: i32) -> (i32, i32) {
    %c0_i32 = arith.constant 0 : i32
    %c0_i32_0 = arith.constant 0 : i32
    %c0_i32_1 = arith.constant 0 : i32
    return %c0_i32, %c0_i32_0 : i32, i32
  }
  func.func @transform_10(%arg0: i32) -> (i32, i32, i32) {
    %c0_i32 = arith.constant 0 : i32
    %c0_i32_0 = arith.constant 0 : i32
    %c0_i32_1 = arith.constant 0 : i32
    %c0_i32_2 = arith.constant 0 : i32
    return %c0_i32, %c0_i32_0, %c0_i32_1 : i32, i32, i32
  }
  func.func @transform_11(%arg0: i32) -> (i32, i32, i32) {
    %c0_i32 = arith.constant 0 : i32
    %c0_i32_0 = arith.constant 0 : i32
    %c0_i32_1 = arith.constant 0 : i32
    %c0_i32_2 = arith.constant 0 : i32
    return %c0_i32, %c0_i32_0, %c0_i32_1 : i32, i32, i32
  }
  func.func @transform_12(%arg0: i32) -> (i32, i32, i32) {
    %c0_i32 = arith.constant 0 : i32
    %c0_i32_0 = arith.constant 0 : i32
    %c0_i32_1 = arith.constant 0 : i32
    %c0_i32_2 = arith.constant 0 : i32
    return %c0_i32, %c0_i32_0, %c0_i32_1 : i32, i32, i32
  }
  func.func @transform_13(%arg0: i32) -> (i32, i32, i32) {
    %c0_i32 = arith.constant 0 : i32
    %c0_i32_0 = arith.constant 0 : i32
    %c0_i32_1 = arith.constant 0 : i32
    %c0_i32_2 = arith.constant 0 : i32
    return %c0_i32, %c0_i32_0, %c0_i32_1 : i32, i32, i32
  }
  func.func @transform_14(%arg0: i32) -> (i32, i32, i32) {
    %c0_i32 = arith.constant 0 : i32
    %c0_i32_0 = arith.constant 0 : i32
    %c0_i32_1 = arith.constant 0 : i32
    %c0_i32_2 = arith.constant 0 : i32
    return %c0_i32, %c0_i32_0, %c0_i32_1 : i32, i32, i32
  }
  func.func @transform_15(%arg0: i32) -> (i32, i32, i32) {
    %c0_i32 = arith.constant 0 : i32
    %c0_i32_0 = arith.constant 0 : i32
    %c0_i32_1 = arith.constant 0 : i32
    %c0_i32_2 = arith.constant 0 : i32
    return %c0_i32, %c0_i32_0, %c0_i32_1 : i32, i32, i32
  }
  func.func @transform_16(%arg0: i32) -> (i32, i32) {
    %c0_i32 = arith.constant 0 : i32
    %c0_i32_0 = arith.constant 0 : i32
    %c0_i32_1 = arith.constant 0 : i32
    return %c0_i32, %c0_i32_0 : i32, i32
  }
  func.func @transform_17(%arg0: i32) -> (i32, i32) {
    %c0_i32 = arith.constant 0 : i32
    %c0_i32_0 = arith.constant 0 : i32
    %c0_i32_1 = arith.constant 0 : i32
    return %c0_i32, %c0_i32_0 : i32, i32
  }
  func.func @transform_18(%arg0: i32) -> (i32, i32) {
    %c0_i32 = arith.constant 0 : i32
    %c0_i32_0 = arith.constant 0 : i32
    %c0_i32_1 = arith.constant 0 : i32
    return %c0_i32, %c0_i32_0 : i32, i32
  }
  func.func @transform_19(%arg0: i32) -> (i32, i32) {
    %c0_i32 = arith.constant 0 : i32
    %c0_i32_0 = arith.constant 0 : i32
    %c0_i32_1 = arith.constant 0 : i32
    return %c0_i32, %c0_i32_0 : i32, i32
  }
  func.func @transform_20(%arg0: i32) -> (i32, i32) {
    %c0_i32 = arith.constant 0 : i32
    %c0_i32_0 = arith.constant 0 : i32
    %c0_i32_1 = arith.constant 0 : i32
    return %c0_i32, %c0_i32_0 : i32, i32
  }
  func.func @transform_21(%arg0: i32) -> (i32, i32) {
    %c0_i32 = arith.constant 0 : i32
    %c0_i32_0 = arith.constant 0 : i32
    %c0_i32_1 = arith.constant 0 : i32
    return %c0_i32, %c0_i32_0 : i32, i32
  }
  func.func @transform_22(%arg0: i32) -> (i32, i32) {
    %c0_i32 = arith.constant 0 : i32
    %c0_i32_0 = arith.constant 0 : i32
    %c0_i32_1 = arith.constant 0 : i32
    return %c0_i32, %c0_i32_0 : i32, i32
  }
  func.func @transform_23(%arg0: i32) -> (i32, i32, i32) {
    %c0_i32 = arith.constant 0 : i32
    %c0_i32_0 = arith.constant 0 : i32
    %c0_i32_1 = arith.constant 0 : i32
    return %arg0, %c0_i32, %c0_i32_0 : i32, i32, i32
  }
}

</mosaic_0001>

<bundles_post_ra>
// kernel: tpu_custom_call.1
= control target key start
LH: loop header
LB: loop body
LE: loop exit
PB: predicated region body
PF: predicated region fallthrough
CT: control target
= control target key end

     0   :  { %s5141_s0 = inlined_call_operand.hbm [shape: f32[2,8,32], index: 0, kind: input, shape index: {}]   ;;  %s5142_s1 = inlined_call_operand.hbm [shape: f32[1,32], index: 1, kind: input, shape index: {}]   ;;  %s5143_s2 = inlined_call_operand.hbm [shape: f32[1,32], index: 2, kind: input, shape index: {}]   ;;  %s5144_s3 = inlined_call_operand.hbm [shape: f32[1,32], index: 3, kind: input, shape index: {}]   ;;  %s5145_s4 = inlined_call_operand.hbm [shape: f32[1,32], index: 4, kind: input, shape index: {}]   ;;  %s5146_s5 = inlined_call_operand.hbm [shape: f32[1,32], index: 5, kind: input, shape index: {}]   ;;  %s5147_s6 = inlined_call_operand.hbm [shape: bf16[32,32], index: 6, kind: input, shape index: {}]   ;;  %s5148_s7 = inlined_call_operand.hbm [shape: bf16[32,32], index: 7, kind: input, shape index: {}]   ;;  %s5149_s8 = inlined_call_operand.hbm [shape: bf16[32,32], index: 8, kind: input, shape index: {}]   ;;  %s5150_s9 = inlined_call_operand.hbm [shape: bf16[32,32], index: 9, kind: input, shape index: {}]   ;;  %s5151_s10 = inlined_call_operand.hbm [shape: f32[4,8,8], index: 10, kind: input, shape index: {}]   ;;  %s5152_s11 = inlined_call_operand.hbm [shape: f32[4,8,1], index: 11, kind: input, shape index: {}]   ;;  %s5153_s12 = inlined_call_operand.hbm [shape: f32[4,8,1], index: 12, kind: input, shape index: {}]   ;;  %s5154_s13 = inlined_call_operand.hbm [shape: f32[4,1,1], index: 13, kind: input, shape index: {}]   ;;  %s5155_s14 = inlined_call_operand.hbm [shape: f32[4,1,8], index: 14, kind: input, shape index: {}]   ;;  %s5156_s15 = inlined_call_operand.hbm [shape: f32[4,1,8], index: 15, kind: input, shape index: {}]   ;;  %s5157_s16 = inlined_call_operand.hbm [shape: bf16[32,32], index: 16, kind: input, shape index: {}]   ;;  %s5158_s17 = inlined_call_operand.hbm [shape: f32[1,32], index: 17, kind: input, shape index: {}]   ;;  %s5159_s18 = inlined_call_operand.hbm [shape: f32[1,32], index: 18, kind: input, shape index: {}]   ;;  %s5160_s19 = inlined_call_operand.hbm [shape: f32[1,32], index: 19, kind: input, shape index: {}]   ;;  %s5161_s20 = inlined_call_operand.hbm [shape: bf16[32,96], index: 20, kind: input, shape index: {}]   ;;  %s5162_s21 = inlined_call_operand.hbm [shape: bf16[96,32], index: 21, kind: input, shape index: {}]   ;;  %s5163_s22 = inlined_call_operand.hbm [shape: bf16[32,32], index: 22, kind: input, shape index: {}]   ;;  %s5164_s23 = inlined_call_operand.hbm [shape: f32[2,8,32], index: 23, kind: output, shape index: {}]  }
   0x1   :  { %5201 = sst [smem:[#allocation59_spill]] %s5141_s0 }
   0x2   :  { %5202 = sst [smem:[#allocation60_spill]] %s5142_s1 }
   0x3   :  { %5203 = sst [smem:[#allocation61_spill]] %s5143_s2 }
   0x4   :  { %5204 = sst [smem:[#allocation62_spill]] %s5144_s3 }
   0x5   :  { %5205 = sst [smem:[#allocation63_spill]] %s5145_s4 }
   0x6   :  { %5206 = sst [smem:[#allocation64_spill]] %s5146_s5 }
   0x7   :  { %5207 = sst [smem:[#allocation65_spill]] %s5147_s6 }
   0x8   :  { %5208 = sst [smem:[#allocation66_spill]] %s5148_s7 }
   0x9   :  { %5209 = sst [smem:[#allocation67_spill]] %s5149_s8 }
   0xa   :  { %5210 = sst [smem:[#allocation68_spill]] %s5150_s9 }
   0xb   :  { %5211 = sst [smem:[#allocation69_spill]] %s5152_s11 }
   0xc   :  { %5212 = sst [smem:[#allocation70_spill]] %s5154_s13 }
   0xd   :  { %5213 = sst [smem:[#allocation71_spill]] %s5163_s22 }
   0xe   :  { %5214 = sst [smem:[#allocation72_spill]] %s5164_s23 }
   0xf   :  { %28 = vsyncpa [#allocation4], 0 }
  0x10   :  { %30 = vsyncpa [#allocation4 + $0x1], 0 }
  0x11   :  { %31 = vsyncpa [#allocation7], 0 }
  0x12   :  { %32 = vsyncpa [#allocation10], 0 }
  0x13   :  { %33 = vsyncpa [#allocation13], 0 }
  0x14   :  { %34 = vsyncpa [#allocation16], 0 }
  0x15   :  { %35 = vsyncpa [#allocation19], 0 }
  0x16   :  { %36 = vsyncpa [#allocation22], 0 }
  0x17   :  { %37 = vsyncpa [#allocation25], 0 }
  0x18   :  { %38 = vsyncpa [#allocation28], 0 }
  0x19   :  { %39 = vsyncpa [#allocation31], 0 }
  0x1a   :  { %40 = vsyncpa [#allocation34], 0 }
  0x1b   :  { %41 = vsyncpa [#allocation37], 0 }
  0x1c   :  { %42 = vsyncpa [#allocation5], 0 }
  0x1d   :  { %44 = vsyncpa [#allocation5 + $0x1], 0  ;;  %s4292_s4 = smov 0   ;;  %s4294_s30 = smov 0  }
  0x1e   :  { %s4296_s24 = smov 0   ;;  %s4298_s25 = smov 0  }
  0x1f LB: > { %5215 = sst [smem:[#allocation53_spill]] %s4119_s4  ;;  %s4133_s5 = smov [#allocation6]   ;;  %s4131_s25 = sphi %s4298_s25, %s4801_s25   ;;  %s4127_s24 = sphi %s4296_s24, %s5289_s24   ;;  %s4123_s30 = sphi %s4294_s30, %s5288_s30   ;;  %s4119_s4 = sphi %s4292_s4, %s5287_s4  }
  0x20   : > { %5216 = sst [smem:[#allocation54_spill]] %s4123_s30  ;;  %s582_s1 = sshll.u32 %s4133_s5, 4  ;;  %s4318_s1 = int_to_ptr.vmem [resolvable:$true] %s582_s1 }
  0x21   : > { %5217 = sst [smem:[#allocation55_spill]] %s4127_s24  ;;  %s4313_s26 = sadd.s32 4294967295, %s4131_s25  }
  0x22   : > { %5218 = sst [smem:[#allocation56_spill]] %s4131_s25  ;;  %p2736_p0 = scmp.ge.s32.totalorder %s4131_s25, 1 }
  0x23   : > { %5219 = sst [smem:[#allocation57_spill]] %s4313_s26  ;;  %p5185_p1 = scmp.eq.s32.totalorder %s4313_s26, 0 }
  0x24   : > { %p569_p2 = scmp.lt.s32.totalorder %s4131_s25, 3  ;;  %s4134_s6 = smov [#allocation9]  }
  0x25   : > { %s604_s27 = sshll.u32 %s4134_s6, 4  ;;  %s4135_s7 = smov [#allocation12]   ;;  %s4327_s27 = int_to_ptr.vmem [resolvable:$true] %s604_s27 }
  0x26   : > { %p4320_p3 = pnand %p2736_p0, %p569_p2  ;;  %s626_s28 = sshll.u32 %s4135_s7, 4  ;;  %s4335_s28 = int_to_ptr.vmem [resolvable:$true] %s626_s28 }
  0x27   : > { %s5223_s5 = sld [smem:[#allocation60_spill]] }
  0x28   : > { %s5220_s2 = scalar_select %p4320_p3, 1, 0 }
  0x29   : > { %p3143_p5 = pneg %p4320_p3 }
  0x2a   : > { %5221 = sst [smem:[#allocation58_spill]] %s5220_s2 }
  0x2b   : > { %p4331_p6 = pnand %p3143_p5, %p5185_p1 }
  0x2d   : > { %s3375_s23 = scalar_lea.hbm %s5223_s5, 16  ;;  %p4345_p8 = pneg %p4331_p6 }
  0x2e   : > { %p3376_p7 = scmp.ne.s32.totalorder %s5223_s5, %s3375_s23  ;;  %p3382_p11 = scmp.lt.u32.totalorder %s3375_s23, %s5223_s5 }
  0x30   : > { %p3378_p9 = pnand %p4345_p8, %p3376_p7 }
  0x32   : > { %p3379_p10 = pneg %p3378_p9 }
  0x34   : > { %p3384_p12 = pnand %p3382_p11, %p3379_p10 }
  0x36   : > { %3387 = shalt.err (!%p3384_p12)
}
  0x37   : > { %s3388_s4 = scalar_lea.vmem %s4318_s1, 16  ;;  %s3395_s2 = scalar_lea.vmem %s4318_s1, 32 }
  0x38   : > { %p3389_p13 = scmp.ne.s32.totalorder %s4318_s1, %s3388_s4  ;;  %p3396_p5 = scmp.lt.s32.totalorder %s4318_s1, %s4318_s1 }
  0x39   : > { %p3397_p7 = scmp.lt.s32.totalorder %s3395_s2, %s3388_s4 }
  0x3a   : > { %p3391_p0 = pnand %p3389_p13, %p4345_p8 }
  0x3b   : > { %p3398_p9 = por %p3397_p7, %p3396_p5 }
  0x3c   : > { %p3392_p2 = pneg %p3391_p0 }
  0x3e   : > { %p3399_p4 = pnand %p3398_p9, %p3392_p2 }
  0x40   : > { %3402 = shalt.err (!%p3399_p4)
}
  0x41   : > { %3146 = dma.hbm_to_vmem [thread:$0]  (!%p4331_p6), %s5223_s5, 16, %s4318_s1, [#allocation7]  }
  0x42   : > { %s5225_s7 = sld [smem:[#allocation62_spill]] }
  0x48   : > { %s3403_s30 = scalar_lea.hbm %s5225_s7, 16 }
  0x49   : > { %p3404_p10 = scmp.ne.s32.totalorder %s5225_s7, %s3403_s30  ;;  %p3410_p4 = scmp.lt.u32.totalorder %s3403_s30, %s5225_s7 }
  0x4b   : > { %p3406_p11 = pnand %p3404_p10, %p4345_p8 }
  0x4d   : > { %p3407_p12 = pneg %p3406_p11 }
  0x4f   : > { %p3412_p13 = pnand %p3410_p4, %p3407_p12 }
  0x51   : > { %3415 = shalt.err (!%p3412_p13)
}
  0x52   : > { %s3416_s1 = scalar_lea.vmem %s4327_s27, 16  ;;  %s3423_s24 = scalar_lea.vmem %s4327_s27, 32 }
  0x53   : > { %p3417_p0 = scmp.ne.s32.totalorder %s4327_s27, %s3416_s1  ;;  %p3424_p7 = scmp.lt.s32.totalorder %s4327_s27, %s4327_s27 }
  0x54   : > { %p3425_p9 = scmp.lt.s32.totalorder %s3423_s24, %s3416_s1 }
  0x55   : > { %p3419_p2 = pnand %p3417_p0, %p4345_p8 }
  0x56   : > { %p3426_p10 = por %p3425_p9, %p3424_p7 }
  0x57   : > { %p3420_p5 = pneg %p3419_p2 }
  0x59   : > { %p3427_p11 = pnand %p3426_p10, %p3420_p5 }
  0x5b   : > { %3430 = shalt.err (!%p3427_p11)
}
  0x5c   : > { %3152 = dma.hbm_to_vmem [thread:$0]  (!%p4331_p6), %s5225_s7, 16, %s4327_s27, [#allocation10]  }
  0x5d   : > { %s5226_s3 = sld [smem:[#allocation64_spill]] }
  0x63   : > { %s3431_s0 = scalar_lea.hbm %s5226_s3, 16 }
  0x64   : > { %p3432_p12 = scmp.ne.s32.totalorder %s5226_s3, %s3431_s0  ;;  %p3438_p0 = scmp.lt.u32.totalorder %s3431_s0, %s5226_s3 }
  0x66   : > { %p3434_p4 = pnand %p3432_p12, %p4345_p8 }
  0x68   : > { %p3435_p13 = pneg %p3434_p4 }
  0x6a   : > { %p3440_p2 = pnand %p3438_p0, %p3435_p13 }
  0x6c   : > { %3443 = shalt.err (!%p3440_p2)
}
  0x6d   : > { %s3444_s27 = scalar_lea.vmem %s4335_s28, 16  ;;  %s3451_s30 = scalar_lea.vmem %s4335_s28, 32 }
  0x6e   : > { %p3445_p5 = scmp.ne.s32.totalorder %s4335_s28, %s3444_s27  ;;  %p3452_p10 = scmp.lt.s32.totalorder %s4335_s28, %s4335_s28 }
  0x6f   : > { %p3453_p11 = scmp.lt.s32.totalorder %s3451_s30, %s3444_s27 }
  0x70   : > { %p3447_p7 = pnand %p3445_p5, %p4345_p8 }
  0x71   : > { %p3454_p12 = por %p3453_p11, %p3452_p10 }
  0x72   : > { %p3448_p9 = pneg %p3447_p7 }
  0x74   : > { %p3455_p4 = pnand %p3454_p12, %p3448_p9 }
  0x76   : > { %3458 = shalt.err (!%p3455_p4)
}
  0x77   : > { %3158 = dma.hbm_to_vmem [thread:$0]  (!%p4331_p6), %s5226_s3, 16, %s4335_s28, [#allocation13]  }
  0x78   : > { %s4136_s26 = smov [#allocation15]   ;;  %s4137_s4 = smov [#allocation18]  }
  0x79   : > { %s649_s0 = sshll.u32 %s4136_s26, 4  ;;  %s675_s2 = sshll.u32 %s4137_s4, 4  ;;  %s650_s0 = int_to_ptr.vmem [resolvable:$true] %s649_s0  ;;  %s676_s2 = int_to_ptr.vmem [resolvable:$true] %s675_s2 }
  0x7a   : > { %s5227_s5 = sld [smem:[#allocation66_spill]] }
  0x80   : > { %s3459_s27 = scalar_lea.hbm %s5227_s5, 256 }
  0x81   : > { %p3460_p13 = scmp.ne.s32.totalorder %s5227_s5, %s3459_s27  ;;  %p3466_p5 = scmp.lt.u32.totalorder %s3459_s27, %s5227_s5 }
  0x83   : > { %p3462_p0 = pnand %p3460_p13, %p4345_p8 }
  0x85   : > { %p3463_p2 = pneg %p3462_p0 }
  0x87   : > { %p3468_p7 = pnand %p3466_p5, %p3463_p2 }
  0x89   : > { %3471 = shalt.err (!%p3468_p7)
}
  0x8a   : > { %s3472_s28 = scalar_lea.vmem %s650_s0, 256  ;;  %p3480_p12 = scmp.lt.s32.totalorder %s650_s0, %s650_s0 }
  0x8b   : > { %p3473_p9 = scmp.ne.s32.totalorder %s650_s0, %s3472_s28  ;;  %p3481_p4 = scmp.lt.s32.totalorder %s3472_s28, %s3472_s28 }
  0x8d   : > { %p3475_p10 = pnand %p3473_p9, %p4345_p8  ;;  %p3482_p1 = por %p3481_p4, %p3480_p12 }
  0x8f   : > { %p3476_p11 = pneg %p3475_p10 }
  0x91   : > { %p3483_p3 = pnand %p3482_p1, %p3476_p11 }
  0x93   : > { %3486 = shalt.err (!%p3483_p3)
}
  0x94   : > { %s5193_s7 = smov 64   ;;  %s5195_s23 = smov 4  }
  0x95   : > { %3164 = dma.hbm_to_vmem [thread:$0]  (!%p4331_p6), %s5227_s5, 256, %s650_s0, [#allocation16], %s5193_s7, %s5193_s7, %s5195_s23  }
  0x96   : > { %s5228_s9 = sld [smem:[#allocation68_spill]] }
  0x9c   : > { %s3487_s24 = scalar_lea.hbm %s5228_s9, 256 }
  0x9d   : > { %p3488_p1 = scmp.ne.s32.totalorder %s5228_s9, %s3487_s24  ;;  %p3494_p0 = scmp.lt.u32.totalorder %s3487_s24, %s5228_s9 }
  0x9f   : > { %p3490_p3 = pnand %p3488_p1, %p4345_p8 }
  0xa1   : > { %p3491_p13 = pneg %p3490_p3 }
  0xa3   : > { %p3496_p2 = pnand %p3494_p0, %p3491_p13 }
  0xa5   : > { %3499 = shalt.err (!%p3496_p2)
}
  0xa6   : > { %s3500_s22 = scalar_lea.vmem %s676_s2, 256  ;;  %p3508_p10 = scmp.lt.s32.totalorder %s676_s2, %s676_s2 }
  0xa7   : > { %p3501_p5 = scmp.ne.s32.totalorder %s676_s2, %s3500_s22  ;;  %p3509_p11 = scmp.lt.s32.totalorder %s3500_s22, %s3500_s22 }
  0xa9   : > { %p3503_p7 = pnand %p3501_p5, %p4345_p8  ;;  %p3510_p12 = por %p3509_p11, %p3508_p10 }
  0xab   : > { %p3504_p9 = pneg %p3503_p7 }
  0xad   : > { %p3511_p4 = pnand %p3510_p12, %p3504_p9 }
  0xaf   : > { %3514 = shalt.err (!%p3511_p4)
}
  0xb0   : > { %3170 = dma.hbm_to_vmem [thread:$0]  (!%p4331_p6), %s5228_s9, 256, %s676_s2, [#allocation19], %s5193_s7, %s5193_s7, %s5195_s23  }
  0xb1   : > { %s4140_s4 = smov [#allocation21]   ;;  %s4141_s24 = smov [#allocation24]  }
  0xb2   : > { %s701_s1 = sshll.u32 %s4140_s4, 4  ;;  %s727_s27 = sshll.u32 %s4141_s24, 4  ;;  %s702_s1 = int_to_ptr.vmem [resolvable:$true] %s701_s1  ;;  %s728_s27 = int_to_ptr.vmem [resolvable:$true] %s727_s27 }
  0xb3   : > { %s5229_s11 = sld [smem:[#allocation69_spill]] }
  0xb9   : > { %s3515_s28 = scalar_lea.hbm %s5229_s11, 512 }
  0xba   : > { %p3516_p1 = scmp.ne.s32.totalorder %s5229_s11, %s3515_s28  ;;  %p3522_p0 = scmp.lt.u32.totalorder %s3515_s28, %s5229_s11 }
  0xbc   : > { %p3518_p3 = pnand %p3516_p1, %p4345_p8 }
  0xbe   : > { %p3519_p13 = pneg %p3518_p3 }
  0xc0   : > { %p3524_p2 = pnand %p3522_p0, %p3519_p13 }
  0xc2   : > { %3527 = shalt.err (!%p3524_p2)
}
  0xc3   : > { %s3528_s2 = scalar_lea.vmem %s702_s1, 512  ;;  %p3536_p10 = scmp.lt.s32.totalorder %s702_s1, %s702_s1 }
  0xc4   : > { %p3529_p5 = scmp.ne.s32.totalorder %s702_s1, %s3528_s2  ;;  %p3537_p11 = scmp.lt.s32.totalorder %s3528_s2, %s3528_s2 }
  0xc6   : > { %p3531_p7 = pnand %p3529_p5, %p4345_p8  ;;  %p3538_p12 = por %p3537_p11, %p3536_p10 }
  0xc8   : > { %p3532_p9 = pneg %p3531_p7 }
  0xca   : > { %p3539_p4 = pnand %p3538_p12, %p3532_p9 }
  0xcc   : > { %3542 = shalt.err (!%p3539_p4)
}
  0xcd   : > { %s5189_s3 = smov 128   ;;  %s5191_s26 = smov 8  }
  0xce   : > { %3176 = dma.hbm_to_vmem [thread:$0]  (!%p4331_p6), %s5229_s11, 512, %s702_s1, [#allocation22], %s5189_s3, %s5189_s3, %s5191_s26  }
  0xcf   : > { %s5230_s13 = sld [smem:[#allocation70_spill]] }
  0xd5   : > { %s3543_s25 = scalar_lea.hbm %s5230_s13, 64 }
  0xd6   : > { %p3544_p1 = scmp.ne.s32.totalorder %s5230_s13, %s3543_s25  ;;  %p3550_p0 = scmp.lt.u32.totalorder %s3543_s25, %s5230_s13 }
  0xd8   : > { %p3546_p3 = pnand %p3544_p1, %p4345_p8 }
  0xda   : > { %p3547_p13 = pneg %p3546_p3 }
  0xdc   : > { %p3552_p2 = pnand %p3550_p0, %p3547_p13 }
  0xde   : > { %3555 = shalt.err (!%p3552_p2)
}
  0xdf   : > { %s3556_s5 = scalar_lea.vmem %s728_s27, 64  ;;  %p3564_p10 = scmp.lt.s32.totalorder %s728_s27, %s728_s27 }
  0xe0   : > { %p3557_p5 = scmp.ne.s32.totalorder %s728_s27, %s3556_s5  ;;  %p3565_p11 = scmp.lt.s32.totalorder %s3556_s5, %s3556_s5 }
  0xe2   : > { %p3559_p7 = pnand %p3557_p5, %p4345_p8  ;;  %p3566_p12 = por %p3565_p11, %p3564_p10 }
  0xe4   : > { %p3560_p9 = pneg %p3559_p7 }
  0xe6   : > { %p3567_p4 = pnand %p3566_p12, %p3560_p9 }
  0xe8   : > { %3570 = shalt.err (!%p3567_p4)
}
  0xe9   : > { %s5197_s1 = smov 16   ;;  %s5198_s4 = smov 1  }
  0xea   : > { %3182 = dma.hbm_to_vmem [thread:$0]  (!%p4331_p6), %s5230_s13, 64, %s728_s27, [#allocation25], %s5197_s1, %s5197_s1, %s5198_s4  }
  0xeb   : > { %s4146_s25 = smov [#allocation27]   ;;  %s4147_s22 = smov [#allocation30]  }
  0xec   : > { %s753_s28 = sshll.u32 %s4146_s25, 4  ;;  %s780_s0 = sshll.u32 %s4147_s22, 4  ;;  %s754_s28 = int_to_ptr.vmem [resolvable:$true] %s753_s28  ;;  %s781_s0 = int_to_ptr.vmem [resolvable:$true] %s780_s0 }
  0xed   : > { %s3571_s3 = scalar_lea.hbm %s5156_s15, 64 }
  0xee   : > { %p3572_p1 = scmp.ne.s32.totalorder %s5156_s15, %s3571_s3  ;;  %p3578_p0 = scmp.lt.u32.totalorder %s3571_s3, %s5156_s15 }
  0xf0   : > { %p3574_p3 = pnand %p3572_p1, %p4345_p8 }
  0xf2   : > { %p3575_p13 = pneg %p3574_p3 }
  0xf4   : > { %p3580_p2 = pnand %p3578_p0, %p3575_p13 }
  0xf6   : > { %3583 = shalt.err (!%p3580_p2)
}
  0xf7   : > { %s3584_s27 = scalar_lea.vmem %s754_s28, 64  ;;  %p3592_p10 = scmp.lt.s32.totalorder %s754_s28, %s754_s28 }
  0xf8   : > { %p3585_p5 = scmp.ne.s32.totalorder %s754_s28, %s3584_s27  ;;  %p3593_p11 = scmp.lt.s32.totalorder %s3584_s27, %s3584_s27 }
  0xfa   : > { %p3587_p7 = pnand %p3585_p5, %p4345_p8  ;;  %p3594_p12 = por %p3593_p11, %p3592_p10 }
  0xfc   : > { %p3588_p9 = pneg %p3587_p7 }
  0xfe   : > { %p3595_p4 = pnand %p3594_p12, %p3588_p9 }
 0x100   : > { %3598 = shalt.err (!%p3595_p4)
}
 0x101   : > { %3188 = dma.hbm_to_vmem [thread:$0]  (!%p4331_p6), %s5156_s15, 64, %s754_s28, [#allocation28], %s5197_s1, %s5197_s1, %s5198_s4  }
 0x102   : > { %s3599_s26 = scalar_lea.hbm %s5158_s17, 16 }
 0x103   : > { %p3600_p1 = scmp.ne.s32.totalorder %s5158_s17, %s3599_s26  ;;  %p3606_p0 = scmp.lt.u32.totalorder %s3599_s26, %s5158_s17 }
 0x105   : > { %p3602_p3 = pnand %p3600_p1, %p4345_p8 }
 0x107   : > { %p3603_p13 = pneg %p3602_p3 }
 0x109   : > { %p3608_p2 = pnand %p3606_p0, %p3603_p13 }
 0x10b   : > { %3611 = shalt.err (!%p3608_p2)
}
 0x10c   : > { %s3612_s2 = scalar_lea.vmem %s781_s0, 16  ;;  %s3619_s28 = scalar_lea.vmem %s781_s0, 32 }
 0x10d   : > { %p3613_p5 = scmp.ne.s32.totalorder %s781_s0, %s3612_s2  ;;  %p3620_p10 = scmp.lt.s32.totalorder %s781_s0, %s781_s0 }
 0x10e   : > { %p3621_p11 = scmp.lt.s32.totalorder %s3619_s28, %s3612_s2 }
 0x10f   : > { %p3615_p7 = pnand %p3613_p5, %p4345_p8 }
 0x110   : > { %p3622_p12 = por %p3621_p11, %p3620_p10 }
 0x111   : > { %p3616_p9 = pneg %p3615_p7 }
 0x113   : > { %p3623_p4 = pnand %p3622_p12, %p3616_p9 }
 0x115   : > { %3626 = shalt.err (!%p3623_p4)
}
 0x116   : > { %3194 = dma.hbm_to_vmem [thread:$0]  (!%p4331_p6), %s5158_s17, 16, %s781_s0, [#allocation31]  }
 0x117   : > { %s4148_s9 = smov [#allocation33]   ;;  %s4149_s23 = smov [#allocation36]  }
 0x118   : > { %s802_s7 = sshll.u32 %s4148_s9, 4  ;;  %s825_s3 = sshll.u32 %s4149_s23, 4  ;;  %s803_s7 = int_to_ptr.vmem [resolvable:$true] %s802_s7  ;;  %s826_s3 = int_to_ptr.vmem [resolvable:$true] %s825_s3 }
 0x119   : > { %s3627_s30 = scalar_lea.hbm %s5160_s19, 16 }
 0x11a   : > { %p3628_p1 = scmp.ne.s32.totalorder %s5160_s19, %s3627_s30  ;;  %p3634_p0 = scmp.lt.u32.totalorder %s3627_s30, %s5160_s19 }
 0x11c   : > { %p3630_p3 = pnand %p3628_p1, %p4345_p8 }
 0x11e   : > { %p3631_p13 = pneg %p3630_p3 }
 0x120   : > { %p3636_p2 = pnand %p3634_p0, %p3631_p13 }
 0x122   : > { %3639 = shalt.err (!%p3636_p2)
}
 0x123   : > { %s3640_s0 = scalar_lea.vmem %s803_s7, 16  ;;  %s3647_s5 = scalar_lea.vmem %s803_s7, 32 }
 0x124   : > { %p3641_p5 = scmp.ne.s32.totalorder %s803_s7, %s3640_s0  ;;  %p3648_p10 = scmp.lt.s32.totalorder %s803_s7, %s803_s7 }
 0x125   : > { %p3649_p11 = scmp.lt.s32.totalorder %s3647_s5, %s3640_s0 }
 0x126   : > { %p3643_p7 = pnand %p3641_p5, %p4345_p8 }
 0x127   : > { %p3650_p12 = por %p3649_p11, %p3648_p10 }
 0x128   : > { %p3644_p9 = pneg %p3643_p7 }
 0x12a   : > { %p3651_p4 = pnand %p3650_p12, %p3644_p9 }
 0x12c   : > { %3654 = shalt.err (!%p3651_p4)
}
 0x12d   : > { %3200 = dma.hbm_to_vmem [thread:$0]  (!%p4331_p6), %s5160_s19, 16, %s803_s7, [#allocation34]  }
 0x12e   : > { %s3655_s24 = scalar_lea.hbm %s5162_s21, 768 }
 0x12f   : > { %p3656_p1 = scmp.ne.s32.totalorder %s5162_s21, %s3655_s24  ;;  %p3662_p0 = scmp.lt.u32.totalorder %s3655_s24, %s5162_s21 }
 0x131   : > { %p3658_p3 = pnand %p3656_p1, %p4345_p8 }
 0x133   : > { %p3659_p13 = pneg %p3658_p3 }
 0x135   : > { %p3664_p2 = pnand %p3662_p0, %p3659_p13 }
 0x137   : > { %3667 = shalt.err (!%p3664_p2)
}
 0x138   : > { %s3668_s28 = scalar_lea.vmem %s826_s3, 768  ;;  %p3676_p10 = scmp.lt.s32.totalorder %s826_s3, %s826_s3 }
 0x139   : > { %p3669_p5 = scmp.ne.s32.totalorder %s826_s3, %s3668_s28  ;;  %p3677_p11 = scmp.lt.s32.totalorder %s3668_s28, %s3668_s28 }
 0x13b   : > { %p3671_p7 = pnand %p3669_p5, %p4345_p8  ;;  %p3678_p12 = por %p3677_p11, %p3676_p10 }
 0x13d   : > { %p3672_p9 = pneg %p3671_p7 }
 0x13f   : > { %p3679_p4 = pnand %p3678_p12, %p3672_p9 }
 0x141   : > { %3682 = shalt.err (!%p3679_p4)
}
 0x142   : > { %s5231_s7 = smov 4   ;;  %s5232_s0 = smov 64  }
 0x143   : > { %3206 = dma.hbm_to_vmem [thread:$0]  (!%p4331_p6), %s5162_s21, 768, %s826_s3, [#allocation37], %s5232_s0, %s5232_s0, %s5231_s7  }
 0x144   : > { %s4150_s9 = smov [#allocation8]   ;;  %s4151_s26 = smov [#allocation11]  }
 0x145   : > { %s593_s23 = sshll.u32 %s4150_s9, 4  ;;  %s615_s24 = sshll.u32 %s4151_s26, 4  ;;  %s594_s23 = int_to_ptr.vmem [resolvable:$true] %s593_s23  ;;  %s616_s24 = int_to_ptr.vmem [resolvable:$true] %s615_s24 }
 0x146   : > { %s5233_s22 = sld [smem:[#allocation61_spill]] }
 0x14c   : > { %s3683_s2 = scalar_lea.hbm %s5233_s22, 16 }
 0x14d   : > { %p3684_p1 = scmp.ne.s32.totalorder %s5233_s22, %s3683_s2  ;;  %p3690_p0 = scmp.lt.u32.totalorder %s3683_s2, %s5233_s22 }
 0x14f   : > { %p3686_p3 = pnand %p3684_p1, %p4345_p8 }
 0x151   : > { %p3687_p13 = pneg %p3686_p3 }
 0x153   : > { %p3692_p2 = pnand %p3690_p0, %p3687_p13 }
 0x155   : > { %3695 = shalt.err (!%p3692_p2)
}
 0x156   : > { %s3696_s3 = scalar_lea.vmem %s594_s23, 16  ;;  %s3703_s27 = scalar_lea.vmem %s594_s23, 32 }
 0x157   : > { %p3697_p5 = scmp.ne.s32.totalorder %s594_s23, %s3696_s3  ;;  %p3704_p10 = scmp.lt.s32.totalorder %s594_s23, %s594_s23 }
 0x158   : > { %p3705_p11 = scmp.lt.s32.totalorder %s3703_s27, %s3696_s3 }
 0x159   : > { %p3699_p7 = pnand %p3697_p5, %p4345_p8 }
 0x15a   : > { %p3706_p12 = por %p3705_p11, %p3704_p10 }
 0x15b   : > { %p3700_p9 = pneg %p3699_p7 }
 0x15d   : > { %p3707_p4 = pnand %p3706_p12, %p3700_p9 }
 0x15f   : > { %3710 = shalt.err (!%p3707_p4)
}
 0x160   : > { %3149 = dma.hbm_to_vmem [thread:$0]  (!%p4331_p6), %s5233_s22, 16, %s594_s23, [#allocation7]  }
 0x161   : > { %s5234_s30 = sld [smem:[#allocation63_spill]] }
 0x167   : > { %s5235_s2 = smov %s5234_s30  ;;  %s3711_s25 = scalar_lea.hbm %s5234_s30, 16 }
 0x168   : > { %p3712_p1 = scmp.ne.s32.totalorder %s5235_s2, %s3711_s25  ;;  %p3718_p0 = scmp.lt.u32.totalorder %s3711_s25, %s5235_s2 }
 0x16a   : > { %p3714_p3 = pnand %p3712_p1, %p4345_p8 }
 0x16c   : > { %p3715_p13 = pneg %p3714_p3 }
 0x16e   : > { %p3720_p2 = pnand %p3718_p0, %p3715_p13 }
 0x170   : > { %3723 = shalt.err (!%p3720_p2)
}
 0x171   : > { %s3724_s1 = scalar_lea.vmem %s616_s24, 16  ;;  %s3731_s23 = scalar_lea.vmem %s616_s24, 32 }
 0x172   : > { %p3725_p5 = scmp.ne.s32.totalorder %s616_s24, %s3724_s1  ;;  %p3732_p10 = scmp.lt.s32.totalorder %s616_s24, %s616_s24 }
 0x173   : > { %p3733_p11 = scmp.lt.s32.totalorder %s3731_s23, %s3724_s1 }
 0x174   : > { %p3727_p7 = pnand %p3725_p5, %p4345_p8 }
 0x175   : > { %p3734_p12 = por %p3733_p11, %p3732_p10 }
 0x176   : > { %p3728_p9 = pneg %p3727_p7 }
 0x178   : > { %p3735_p4 = pnand %p3734_p12, %p3728_p9 }
 0x17a   : > { %3738 = shalt.err (!%p3735_p4)
}
 0x17b   : > { %3155 = dma.hbm_to_vmem [thread:$0]  (!%p4331_p6), %s5235_s2, 16, %s616_s24, [#allocation10]  }
 0x17c   : > { %s4152_s26 = smov [#allocation14]   ;;  %s4153_s25 = smov [#allocation17]  }
 0x17d   : > { %s636_s30 = sshll.u32 %s4152_s26, 4  ;;  %s662_s28 = sshll.u32 %s4153_s25, 4  ;;  %s637_s30 = int_to_ptr.vmem [resolvable:$true] %s636_s30  ;;  %s663_s28 = int_to_ptr.vmem [resolvable:$true] %s662_s28 }
 0x17e   : > { %s5236_s27 = sld [smem:[#allocation65_spill]] }
 0x184   : > { %s3739_s11 = scalar_lea.hbm %s5236_s27, 256 }
 0x185   : > { %p3740_p1 = scmp.ne.s32.totalorder %s5236_s27, %s3739_s11  ;;  %p3746_p0 = scmp.lt.u32.totalorder %s3739_s11, %s5236_s27 }
 0x187   : > { %p3742_p3 = pnand %p3740_p1, %p4345_p8 }
 0x189   : > { %p3743_p13 = pneg %p3742_p3 }
 0x18b   : > { %p3748_p2 = pnand %p3746_p0, %p3743_p13 }
 0x18d   : > { %3751 = shalt.err (!%p3748_p2)
}
 0x18e   : > { %s3752_s24 = scalar_lea.vmem %s637_s30, 256  ;;  %p3760_p10 = scmp.lt.s32.totalorder %s637_s30, %s637_s30 }
 0x18f   : > { %p3753_p5 = scmp.ne.s32.totalorder %s637_s30, %s3752_s24  ;;  %p3761_p11 = scmp.lt.s32.totalorder %s3752_s24, %s3752_s24 }
 0x191   : > { %p3755_p7 = pnand %p3753_p5, %p4345_p8  ;;  %p3762_p12 = por %p3761_p11, %p3760_p10 }
 0x193   : > { %p3756_p9 = pneg %p3755_p7 }
 0x195   : > { %p3763_p4 = pnand %p3762_p12, %p3756_p9 }
 0x197   : > { %3766 = shalt.err (!%p3763_p4)
}
 0x198   : > { %3161 = dma.hbm_to_vmem [thread:$0]  (!%p4331_p6), %s5236_s27, 256, %s637_s30, [#allocation13], %s5232_s0, %s5232_s0, %s5231_s7  }
 0x199   : > { %s5237_s8 = sld [smem:[#allocation67_spill]] }
 0x19f   : > { %s3767_s25 = scalar_lea.hbm %s5237_s8, 256 }
 0x1a0   : > { %p3768_p1 = scmp.ne.s32.totalorder %s5237_s8, %s3767_s25  ;;  %p3774_p0 = scmp.lt.u32.totalorder %s3767_s25, %s5237_s8 }
 0x1a2   : > { %p3770_p3 = pnand %p3768_p1, %p4345_p8 }
 0x1a4   : > { %p3771_p13 = pneg %p3770_p3 }
 0x1a6   : > { %p3776_p2 = pnand %p3774_p0, %p3771_p13 }
 0x1a8   : > { %3779 = shalt.err (!%p3776_p2)
}
 0x1a9   : > { %s3780_s9 = scalar_lea.vmem %s663_s28, 256  ;;  %p3788_p10 = scmp.lt.s32.totalorder %s663_s28, %s663_s28 }
 0x1aa   : > { %p3781_p5 = scmp.ne.s32.totalorder %s663_s28, %s3780_s9  ;;  %p3789_p11 = scmp.lt.s32.totalorder %s3780_s9, %s3780_s9 }
 0x1ac   : > { %p3783_p7 = pnand %p3781_p5, %p4345_p8  ;;  %p3790_p12 = por %p3789_p11, %p3788_p10 }
 0x1ae   : > { %p3784_p9 = pneg %p3783_p7 }
 0x1b0   : > { %p3791_p4 = pnand %p3790_p12, %p3784_p9 }
 0x1b2   : > { %3794 = shalt.err (!%p3791_p4)
}
 0x1b3   : > { %3167 = dma.hbm_to_vmem [thread:$0]  (!%p4331_p6), %s5237_s8, 256, %s663_s28, [#allocation16], %s5232_s0, %s5232_s0, %s5231_s7  }
 0x1b4   : > { %s4154_s13 = smov [#allocation20]   ;;  %s4155_s4 = smov [#allocation23]  }
 0x1b5   : > { %s688_s11 = sshll.u32 %s4154_s13, 4  ;;  %s714_s26 = sshll.u32 %s4155_s4, 4  ;;  %s689_s11 = int_to_ptr.vmem [resolvable:$true] %s688_s11  ;;  %s715_s26 = int_to_ptr.vmem [resolvable:$true] %s714_s26 }
 0x1b6   : > { %s3795_s3 = scalar_lea.hbm %s5151_s10, 512 }
 0x1b7   : > { %p3796_p1 = scmp.ne.s32.totalorder %s5151_s10, %s3795_s3  ;;  %p3802_p0 = scmp.lt.u32.totalorder %s3795_s3, %s5151_s10 }
 0x1b9   : > { %p3798_p3 = pnand %p3796_p1, %p4345_p8 }
 0x1bb   : > { %p3799_p13 = pneg %p3798_p3 }
 0x1bd   : > { %p3804_p2 = pnand %p3802_p0, %p3799_p13 }
 0x1bf   : > { %3807 = shalt.err (!%p3804_p2)
}
 0x1c0   : > { %s3808_s28 = scalar_lea.vmem %s689_s11, 512  ;;  %p3816_p10 = scmp.lt.s32.totalorder %s689_s11, %s689_s11 }
 0x1c1   : > { %p3809_p5 = scmp.ne.s32.totalorder %s689_s11, %s3808_s28  ;;  %p3817_p11 = scmp.lt.s32.totalorder %s3808_s28, %s3808_s28 }
 0x1c3   : > { %p3811_p7 = pnand %p3809_p5, %p4345_p8  ;;  %p3818_p12 = por %p3817_p11, %p3816_p10 }
 0x1c5   : > { %p3812_p9 = pneg %p3811_p7 }
 0x1c7   : > { %p3819_p4 = pnand %p3818_p12, %p3812_p9 }
 0x1c9   : > { %3822 = shalt.err (!%p3819_p4)
}
 0x1ca   : > { %s5238_s24 = smov 8   ;;  %s5239_s13 = smov 128  }
 0x1cb   : > { %3173 = dma.hbm_to_vmem [thread:$0]  (!%p4331_p6), %s5151_s10, 512, %s689_s11, [#allocation19], %s5239_s13, %s5239_s13, %s5238_s24  }
 0x1cc   : > { %s3823_s1 = scalar_lea.hbm %s5153_s12, 512 }
 0x1cd   : > { %p3824_p1 = scmp.ne.s32.totalorder %s5153_s12, %s3823_s1  ;;  %p3830_p0 = scmp.lt.u32.totalorder %s3823_s1, %s5153_s12 }
 0x1cf   : > { %p3826_p3 = pnand %p3824_p1, %p4345_p8 }
 0x1d1   : > { %p3827_p13 = pneg %p3826_p3 }
 0x1d3   : > { %p3832_p2 = pnand %p3830_p0, %p3827_p13 }
 0x1d5   : > { %3835 = shalt.err (!%p3832_p2)
}
 0x1d6   : > { %s3836_s4 = scalar_lea.vmem %s715_s26, 512  ;;  %p3844_p10 = scmp.lt.s32.totalorder %s715_s26, %s715_s26 }
 0x1d7   : > { %p3837_p5 = scmp.ne.s32.totalorder %s715_s26, %s3836_s4  ;;  %p3845_p11 = scmp.lt.s32.totalorder %s3836_s4, %s3836_s4 }
 0x1d9   : > { %p3839_p7 = pnand %p3837_p5, %p4345_p8  ;;  %p3846_p12 = por %p3845_p11, %p3844_p10 }
 0x1db   : > { %p3840_p9 = pneg %p3839_p7 }
 0x1dd   : > { %p3847_p4 = pnand %p3846_p12, %p3840_p9 }
 0x1df   : > { %3850 = shalt.err (!%p3847_p4)
}
 0x1e0   : > { %3179 = dma.hbm_to_vmem [thread:$0]  (!%p4331_p6), %s5153_s12, 512, %s715_s26, [#allocation22], %s5239_s13, %s5239_s13, %s5238_s24  }
 0x1e1   : > { %s4156_s5 = smov [#allocation26]   ;;  %s4157_s1 = smov [#allocation29]  }
 0x1e2   : > { %s740_s3 = sshll.u32 %s4156_s5, 4  ;;  %s766_s23 = sshll.u32 %s4157_s1, 4  ;;  %s741_s3 = int_to_ptr.vmem [resolvable:$true] %s740_s3  ;;  %s767_s23 = int_to_ptr.vmem [resolvable:$true] %s766_s23 }
 0x1e3   : > { %s3851_s28 = scalar_lea.hbm %s5155_s14, 64 }
 0x1e4   : > { %p3852_p1 = scmp.ne.s32.totalorder %s5155_s14, %s3851_s28  ;;  %p3858_p0 = scmp.lt.u32.totalorder %s3851_s28, %s5155_s14 }
 0x1e6   : > { %p3854_p3 = pnand %p3852_p1, %p4345_p8 }
 0x1e8   : > { %p3855_p13 = pneg %p3854_p3 }
 0x1ea   : > { %p3860_p2 = pnand %p3858_p0, %p3855_p13 }
 0x1ec   : > { %3863 = shalt.err (!%p3860_p2)
}
 0x1ed   : > { %s3864_s26 = scalar_lea.vmem %s741_s3, 64  ;;  %p3872_p10 = scmp.lt.s32.totalorder %s741_s3, %s741_s3 }
 0x1ee   : > { %p3865_p5 = scmp.ne.s32.totalorder %s741_s3, %s3864_s26  ;;  %p3873_p11 = scmp.lt.s32.totalorder %s3864_s26, %s3864_s26 }
 0x1f0   : > { %p3867_p7 = pnand %p3865_p5, %p4345_p8  ;;  %p3874_p12 = por %p3873_p11, %p3872_p10 }
 0x1f2   : > { %p3868_p9 = pneg %p3867_p7 }
 0x1f4   : > { %p3875_p4 = pnand %p3874_p12, %p3868_p9 }
 0x1f6   : > { %3878 = shalt.err (!%p3875_p4)
}
 0x1f7   : > { %s5240_s2 = smov 1   ;;  %s5241_s24 = smov 16  }
 0x1f8   : > { %3185 = dma.hbm_to_vmem [thread:$0]  (!%p4331_p6), %s5155_s14, 64, %s741_s3, [#allocation25], %s5241_s24, %s5241_s24, %s5240_s2  }
 0x1f9   : > { %s3879_s1 = scalar_lea.hbm %s5157_s16, 256 }
 0x1fa   : > { %p3880_p1 = scmp.ne.s32.totalorder %s5157_s16, %s3879_s1  ;;  %p3886_p0 = scmp.lt.u32.totalorder %s3879_s1, %s5157_s16 }
 0x1fc   : > { %p3882_p3 = pnand %p3880_p1, %p4345_p8 }
 0x1fe   : > { %p3883_p13 = pneg %p3882_p3 }
 0x200   : > { %p3888_p2 = pnand %p3886_p0, %p3883_p13 }
 0x202   : > { %3891 = shalt.err (!%p3888_p2)
}
 0x203   : > { %s3892_s11 = scalar_lea.vmem %s767_s23, 256  ;;  %p3900_p10 = scmp.lt.s32.totalorder %s767_s23, %s767_s23 }
 0x204   : > { %p3893_p5 = scmp.ne.s32.totalorder %s767_s23, %s3892_s11  ;;  %p3901_p11 = scmp.lt.s32.totalorder %s3892_s11, %s3892_s11 }
 0x206   : > { %p3895_p7 = pnand %p3893_p5, %p4345_p8  ;;  %p3902_p12 = por %p3901_p11, %p3900_p10 }
 0x208   : > { %p3896_p9 = pneg %p3895_p7 }
 0x20a   : > { %p3903_p4 = pnand %p3902_p12, %p3896_p9 }
 0x20c   : > { %3906 = shalt.err (!%p3903_p4)
}
 0x20d   : > { %3191 = dma.hbm_to_vmem [thread:$0]  (!%p4331_p6), %s5157_s16, 256, %s767_s23, [#allocation28], %s5232_s0, %s5232_s0, %s5231_s7  }
 0x20e   : > { %s4158_s2 = smov [#allocation32]   ;;  %s4159_s8 = smov [#allocation35]  }
 0x20f   : > { %s791_s24 = sshll.u32 %s4158_s2, 4  ;;  %s812_s13 = sshll.u32 %s4159_s8, 4  ;;  %s792_s24 = int_to_ptr.vmem [resolvable:$true] %s791_s24  ;;  %s813_s13 = int_to_ptr.vmem [resolvable:$true] %s812_s13 }
 0x210   : > { %s3907_s1 = scalar_lea.hbm %s5159_s18, 16 }
 0x211   : > { %p3908_p1 = scmp.ne.s32.totalorder %s5159_s18, %s3907_s1  ;;  %p3914_p0 = scmp.lt.u32.totalorder %s3907_s1, %s5159_s18 }
 0x213   : > { %p3910_p3 = pnand %p3908_p1, %p4345_p8 }
 0x215   : > { %p3911_p13 = pneg %p3910_p3 }
 0x217   : > { %p3916_p2 = pnand %p3914_p0, %p3911_p13 }
 0x219   : > { %3919 = shalt.err (!%p3916_p2)
}
 0x21a   : > { %s3920_s23 = scalar_lea.vmem %s792_s24, 16  ;;  %s3927_s11 = scalar_lea.vmem %s792_s24, 32 }
 0x21b   : > { %p3921_p5 = scmp.ne.s32.totalorder %s792_s24, %s3920_s23  ;;  %p3928_p10 = scmp.lt.s32.totalorder %s792_s24, %s792_s24 }
 0x21c   : > { %p3929_p11 = scmp.lt.s32.totalorder %s3927_s11, %s3920_s23 }
 0x21d   : > { %p3923_p7 = pnand %p3921_p5, %p4345_p8 }
 0x21e   : > { %p3930_p12 = por %p3929_p11, %p3928_p10 }
 0x21f   : > { %p3924_p9 = pneg %p3923_p7 }
 0x221   : > { %p3931_p4 = pnand %p3930_p12, %p3924_p9 }
 0x223   : > { %3934 = shalt.err (!%p3931_p4)
}
 0x224   : > { %3197 = dma.hbm_to_vmem [thread:$0]  (!%p4331_p6), %s5159_s18, 16, %s792_s24, [#allocation31]  }
 0x225   : > { %s3935_s25 = scalar_lea.hbm %s5161_s20, 256 }
 0x226   : > { %p3936_p1 = scmp.ne.s32.totalorder %s5161_s20, %s3935_s25  ;;  %p3942_p0 = scmp.lt.u32.totalorder %s3935_s25, %s5161_s20 }
 0x228   : > { %p3938_p3 = pnand %p3936_p1, %p4345_p8 }
 0x22a   : > { %p3939_p13 = pneg %p3938_p3 }
 0x22c   : > { %p3944_p2 = pnand %p3942_p0, %p3939_p13 }
 0x22e   : > { %3947 = shalt.err (!%p3944_p2)
}
 0x22f   : > { %s3948_s28 = scalar_lea.vmem %s813_s13, 256  ;;  %p3956_p10 = scmp.lt.s32.totalorder %s813_s13, %s813_s13 }
 0x230   : > { %p3949_p5 = scmp.ne.s32.totalorder %s813_s13, %s3948_s28  ;;  %p3957_p11 = scmp.lt.s32.totalorder %s3948_s28, %s3948_s28 }
 0x232   : > { %p3951_p7 = pnand %p3949_p5, %p4345_p8  ;;  %p3958_p12 = por %p3957_p11, %p3956_p10 }
 0x234   : > { %p3952_p9 = pneg %p3951_p7 }
 0x236   : > { %p3959_p4 = pnand %p3958_p12, %p3952_p9 }
 0x238   : > { %3962 = shalt.err (!%p3959_p4)
}
 0x239   : > { %3203 = dma.hbm_to_vmem [thread:$0]  (!%p4331_p6), %s5161_s20, 256, %s813_s13, [#allocation34], %s5232_s0, %s5232_s0, %s5231_s7  }
 0x23a   : > { %s4160_s23 = smov [#allocation38]   ;;  %s5242_s2 = sld [smem:[#allocation71_spill]] }
 0x23b   : > { %s838_s11 = sshll.u32 %s4160_s23, 4  ;;  %s839_s11 = int_to_ptr.vmem [resolvable:$true] %s838_s11 }
 0x240   : > { %s3963_s8 = scalar_lea.hbm %s5242_s2, 256 }
 0x241   : > { %p3964_p1 = scmp.ne.s32.totalorder %s5242_s2, %s3963_s8  ;;  %p3970_p0 = scmp.lt.u32.totalorder %s3963_s8, %s5242_s2 }
 0x243   : > { %p3966_p3 = pnand %p3964_p1, %p4345_p8 }
 0x245   : > { %p3967_p13 = pneg %p3966_p3 }
 0x247   : > { %p3972_p2 = pnand %p3970_p0, %p3967_p13 }
 0x249   : > { %3975 = shalt.err (!%p3972_p2)
}
 0x24a   : > { %s3976_s13 = scalar_lea.vmem %s839_s11, 256  ;;  %p3984_p10 = scmp.lt.s32.totalorder %s839_s11, %s839_s11 }
 0x24b   : > { %p3977_p5 = scmp.ne.s32.totalorder %s839_s11, %s3976_s13  ;;  %p3985_p11 = scmp.lt.s32.totalorder %s3976_s13, %s3976_s13 }
 0x24d   : > { %p3979_p7 = pnand %p3977_p5, %p4345_p8  ;;  %p3986_p12 = por %p3985_p11, %p3984_p10 }
 0x24f   : > { %p3980_p9 = pneg %p3979_p7 }
 0x251   : > { %p3987_p4 = pnand %p3986_p12, %p3980_p9 }
 0x253   : > { %3990 = shalt.err (!%p3987_p4)
}
 0x254   : > { %s5243_s24 = sld [smem:[#allocation56_spill]]  ;;  %s5244_s4 = sld [smem:[#allocation55_spill]] }
 0x255   : > { %s5245_s6 = sld [smem:[#allocation54_spill]]  ;;  %s5246_s23 = sld [smem:[#allocation53_spill]] }
 0x256   : > { %s5247_s3 = sld [smem:[#allocation57_spill]] }
 0x257   : > { %3209 = dma.hbm_to_vmem [thread:$0]  (!%p4331_p6), %s5242_s2, 256, %s839_s11, [#allocation37], %s5232_s0, %s5232_s0, %s5231_s7  }
 0x25a   : > { %s2735_s29 = sadd.s32 4294967294, %s5243_s24   ;;  %s4801_s25 = sadd.s32 1, %s5243_s24  }
 0x25b   : > { %s54_s26 = ssub.s32 %s5243_s24, %s4801_s25  ;;  %s57_s8 = sadd.s32 1, %s5244_s4 }
 0x25c   : > { %p55_p8 = scmp.eq.s32.totalorder %s54_s26, 0  ;;  %p64_p1 = scmp.ne.s32.totalorder %s5244_s4, %s5245_s6 }
 0x25d   : > { %p65_p3 = scmp.eq.s32.totalorder %s5243_s24, 0  ;;  %p70_p13 = scmp.ne.s32.totalorder %s5245_s6, %s5246_s23 }
 0x25e   : > { %s4812_s5 = scalar_select %p55_p8, %s5244_s4, %s57_s8  }
 0x25f   : > { %p4814_p0 = por %p65_p3, %p64_p1  ;;  %p5249_p2 = scmp.eq.s32.totalorder %s5247_s3, 0 }
 0x260   : > { %p556_p5 = scmp.eq.s32.totalorder %s5247_s3, 1  ;;  %p562_p7 = scmp.eq.s32.totalorder %s2735_s29, 1 }
 0x261   : > { %p4820_p6 = por %p5249_p2, %p70_p13  ;;  %p3240_p9 = scmp.lt.s32.totalorder %s5243_s24, 2 }
 0x262   : > { %s852_s0 = sand.u32 1, %s5244_s4   ;;  %p4827_p10 = por %p556_p5, %p64_p1 }
 0x263   : > { %p4831_p11 = por %p562_p7, %p70_p13  ;;  %s2760_s13 = sshll.u32 %s852_s0, 3 }
 0x264   : > { %s5251_s11 = scalar_select %p4827_p10, 1, 0 }
 0x265   : > { %s5252_s9 = scalar_select %p4831_p11, 1, 0 }
 0x266   : > { %s2761_s30 = sshll.u32 %s5243_s24, 7  ;;  %s5253_s23 = sld [smem:[#allocation59_spill]] }
 0x267   : > { %s856_s4 = scalar_lea.vmem [#allocation3], %s2760_s13  ;;  %p4845_p12 = pnand %p3240_p9, %p4814_p0 }
 0x268   : > { %s863_s3 = sshll.u32 %s856_s4, 4  ;;  %s853_s24 = scalar_lea.sflag [#allocation4], %s852_s0  ;;  %s4841_s3 = int_to_ptr.vmem [resolvable:$true] %s863_s3 }
 0x269   : > { %p3993_p8 = pneg %p4845_p12 }
 0x26c   : > { %s4839_s26 = scalar_lea.hbm %s5253_s23, %s2761_s30  ;;  %s3996_s28 = scalar_lea.hbm %s5253_s23, 256 }
 0x26d   : > { %s3991_s8 = scalar_lea.hbm %s4839_s26, 128  ;;  %p3997_p13 = scmp.lt.u32.totalorder %s4839_s26, %s5253_s23 }
 0x26e   : > { %p3992_p4 = scmp.ne.s32.totalorder %s4839_s26, %s3991_s8  ;;  %p3998_p0 = scmp.lt.u32.totalorder %s3996_s28, %s3991_s8 }
 0x26f   : > { %p4000_p5 = scmp.lt.u32.totalorder %s3991_s8, %s4839_s26 }
 0x270   : > { %p3994_p1 = pnand %p3993_p8, %p3992_p4  ;;  %p3999_p2 = por %p3998_p0, %p3997_p13 }
 0x272   : > { %p3995_p3 = pneg %p3994_p1  ;;  %p4001_p7 = por %p4000_p5, %p3999_p2 }
 0x274   : > { %p4002_p9 = pnand %p4001_p7, %p3995_p3 }
 0x276   : > { %4005 = shalt.err (!%p4002_p9)
}
 0x277   : > { %s4006_s0 = scalar_lea.vmem %s4841_s3, 128  ;;  %s4161_s4 = smov [#allocation3]  }
 0x278   : > { %p4007_p4 = scmp.ne.s32.totalorder %s4841_s3, %s4006_s0  ;;  %s4011_s13 = sshll.u32 %s4161_s4, 4  ;;  %s4012_s13 = int_to_ptr.vmem [resolvable:$false] %s4011_s13 }
 0x279   : > { %s4013_s30 = scalar_lea.vmem %s4012_s13, 256  ;;  %p4014_p10 = scmp.lt.s32.totalorder %s4841_s3, %s4012_s13 }
 0x27a   : > { %p4009_p1 = pnand %p4007_p4, %p3993_p8  ;;  %p4015_p13 = scmp.lt.s32.totalorder %s4013_s30, %s4006_s0 }
 0x27c   : > { %p4010_p11 = pneg %p4009_p1  ;;  %p4016_p0 = por %p4015_p13, %p4014_p10 }
 0x27e   : > { %p4017_p2 = pnand %p4016_p0, %p4010_p11 }
 0x280   : > { %4020 = shalt.err (!%p4017_p2)
}
 0x281   : > { %3213 = dma.hbm_to_vmem [thread:$0]  (!%p4845_p12), %s4839_s26, 128, %s4841_s3, %s853_s24  }
 0x282   : > { %s5255_s8 = sld [smem:[#allocation58_spill]] }
 0x288   : > { %p5256_p3 = scmp.ne.s32.totalorder %s5255_s8, 0 }
 0x289   : > { %s5257_s28 = sld [smem:[#allocation54_spill]] (!%p5256_p3) }
 0x28a   : > { %872 = sbr.rel (%p5256_p3) target bundleno = 3455 (0xd7f), region = 112 }
 0x28f   : > { %s4877_s1 = sand.u32 (!%p5256_p3), 1, %s5257_s28  }
 0x290   : > { %s2763_s6 = sshll.u32 (!%p5256_p3), %s4877_s1, 3  ;;  %s875_s0 = scalar_lea.sflag (!%p5256_p3), [#allocation4], %s4877_s1 }
 0x291   : > { %s878_s4 = scalar_lea.vmem [#allocation3], %s2763_s6 }
 0x292   : > { %4066 = dma.done.wait (%p4820_p6), %s875_s0, 128  }
 0x293   : > { %4068 = vsyncadd (%p4820_p6), %s875_s0, 4294967168  ;;  %s5258_s26 = sld [smem:[#allocation57_spill]] }
 0x299   : > { %p5259_p10 = scmp.eq.s32.totalorder %s5258_s26, 0 }
 0x29b   : > { %4070 = dma.done.wait (%p5259_p10), [#allocation7], 32   ;;  %p5260_p11 = pmov %p5259_p10 }
 0x29c   : > { %p5261_p12 = pmov %p5259_p10 }
 0x29d   : > { %4072 = vsyncadd (%p5260_p11), [#allocation7], 4294967264 }
 0x29e   : > { %4074 = dma.done.wait (%p5261_p12), [#allocation10], 32   ;;  %p5262_p8 = pmov %p5259_p10 }
 0x2a0   : > { %4076 = vsyncadd (%p5262_p8), [#allocation10], 4294967264  ;;  %p5263_p5 = pmov %p5262_p8 }
 0x2a2   : > { %4078 = dma.done.wait (%p5263_p5), [#allocation13], 272   ;;  %p5264_p7 = pmov %p5263_p5 }
 0x2a3   : > { %p5265_p6 = pmov %p5263_p5 }
 0x2a4   : > { %4080 = vsyncadd (%p5264_p7), [#allocation13], 4294967024 }
 0x2a5   : > { %4082 = dma.done.wait (%p5265_p6), [#allocation16], 512   ;;  %p5266_p9 = pmov %p5263_p5 }
 0x2a6   : > { %p5267_p4 = pmov %p5263_p5 }
 0x2a7   : > { %4084 = vsyncadd (%p5266_p9), [#allocation16], 4294966784 }
 0x2a8   : > { %4086 = dma.done.wait (%p5267_p4), [#allocation19], 768   ;;  %p5268_p1 = pmov %p5267_p4 }
 0x2aa   : > { %4088 = vsyncadd (%p5268_p1), [#allocation19], 4294966528  ;;  %p5269_p13 = pmov %p5268_p1 }
 0x2ab   : > { %p5270_p0 = pmov %p5268_p1 }
 0x2ac   : > { %4090 = dma.done.wait (%p5269_p13), [#allocation22], 1024  }
 0x2ad   : > { %4092 = vsyncadd (%p5270_p0), [#allocation22], 4294966272  ;;  %p5271_p2 = pmov %p5270_p0 }
 0x2ae   : > { %p5272_p3 = pmov %p5270_p0 }
 0x2af   : > { %4094 = dma.done.wait (%p5271_p2), [#allocation25], 128  }
 0x2b0   : > { %4096 = vsyncadd (%p5272_p3), [#allocation25], 4294967168  ;;  %p5273_p10 = pmov %p5270_p0 }
 0x2b1   : > { %p5274_p11 = pmov %p5270_p0 }
 0x2b2   : > { %4098 = dma.done.wait (%p5273_p10), [#allocation28], 320  }
 0x2b3   : > { %4100 = vsyncadd (%p5274_p11), [#allocation28], 4294966976  ;;  %p5275_p12 = pmov %p5270_p0 }
 0x2b4   : > { %p5276_p8 = pmov %p5270_p0 }
 0x2b5   : > { %4102 = dma.done.wait (%p5275_p12), [#allocation31], 32  }
 0x2b6   : > { %4104 = vsyncadd (%p5276_p8), [#allocation31], 4294967264  ;;  %p5277_p5 = pmov %p5270_p0 }
 0x2b7   : > { %p5278_p7 = pmov %p5270_p0 }
 0x2b8   : > { %4106 = dma.done.wait (%p5277_p5), [#allocation34], 272  }
 0x2b9   : > { %4108 = vsyncadd (%p5278_p7), [#allocation34], 4294967024  ;;  %p5279_p6 = pmov %p5270_p0 }
 0x2ba   : > { %p5280_p9 = pmov %p5270_p0 }
 0x2bb   : > { %4110 = dma.done.wait (%p5279_p6), [#allocation37], 1024  }
 0x2bc   : > { %4112 = vsyncadd (%p5280_p9), [#allocation37], 4294966272  ;;  %vm1032_vm0 = vcmask 261120   ;;  %v4931_v0 = vld [vmem:[%s878_s4] sm:$0xff]  ;;  %v4162_v9 = vmov 0.0   ;;  %vm4163_vm1 = vmmov 0   ;;  %v1055_v15 = vlaneseq }
 0x2bd   : > { %v1033_v1 = vsel %vm1032_vm0, %v4931_v0, 0.0  ;;  %v3335_v7 = vld [vmem:[#allocation14] sm:$0xff]   ;;  %2907 = vmatprep.subr.bf16.mxu1 %v4162_v9  ;;  %2923 = vmatprep.subr.bf16.mxu0 %v4162_v9  ;;  %v3337_v10 = vld [vmem:[#allocation14 + $0x8] sm:$0xff]   ;;  %v2787_v17 = vld [vmem:[#allocation6] ss:$0 sm:$0xff]  ;;  %v4164_v44 = vmov 0  }
 0x2be   : > { %1034 = vadd.xlane.f32.xlu0 %v1033_v1  ;;  %v3336_v8 = vld [vmem:[#allocation17] sm:$0xff]   ;;  %2908 = vmatpush3.bf16.msra.mxu1 %v3335_v7  ;;  %v3338_v11 = vld [vmem:[#allocation17 + $0x8] sm:$0xff]   ;;  %v4947_v18 = vshrl.u32 %v1055_v15, 7  ;;  %v2790_v23 = vld [vmem:[#allocation11] ss:$0 sm:$0xff]  ;;  %vm1351_vm3 = vcmask 64512  }
 0x2bf   : > { %2924 = vmatpush3.bf16.msra.mxu0 %v3336_v8  ;;  %2909 = vmatprep.subr.bf16.mxu1 %v4162_v9  ;;  %v2789_v24 = vld [vmem:[#allocation9] ss:$0 sm:$0xff]  ;;  %v2788_v28 = vld [vmem:[#allocation8] ss:$0 sm:$0xff]  ;;  %v3339_v31 = vld [vmem:[#allocation15] sm:$0xff]   ;;  %s4165_s7 = smov 120  }
 0x2c0   : > { %2925 = vmatprep.subr.bf16.mxu0 %v4162_v9  ;;  %2911 = vmatprep.mubr.msk.bf16.mxu1 %vm4163_vm1, %v4162_v9  ;;  %vm1057_vm2 = vcmp.eq.s32.totalorder %v4947_v18, 0  ;;  %v3340_v35 = vld [vmem:[#allocation15 + $0x8] sm:$0xff]   ;;  %v3341_v38 = vld [vmem:[#allocation18] sm:$0xff]   ;;  %v1532_v55 = vld [vmem:[#allocation23 + $0x8] sm:$0xff]  ;;  %vm1400_vm4 = vcmask 1043456   ;;  %s4166_s3 = smov 112  }
 0x2c1   : > { %2927 = vmatprep.mubr.msk.bf16.mxu0 %vm4163_vm1, %v4162_v9  ;;  %v2791_v37 = vld [vmem:[#allocation12] ss:$0 sm:$0xff]  ;;  %3333 = vset.pattern.permute.xlu0 %v4164_v44  ;;  %v1348_v57 = vld [vmem:[#allocation23] sm:$0xff]  ;;  %s4167_s29 = smov 104   ;;  %s4168_s24 = smov 8   ;;  %vm1527_vm5 = vcmask 60416  }
 0x2c2   : > { %2910 = vmatpush3.bf16.msra.mxu1 %v3337_v10  ;;  %v3342_v41 = vld [vmem:[#allocation18 + $0x8] sm:$0xff]   ;;  %3334 = vset.pattern.permute.xlu1 %v4164_v44  ;;  %vm1725_vm6 = vcmask 126016   ;;  %s4169_s13 = smov 16   ;;  %s4170_s30 = smov 24   ;;  %vm1919_vm7 = vcmask 191616   ;;  %vm2113_vm8 = vcmask 257216  }
 0x2c3   : > { %2926 = vmatpush3.bf16.msra.mxu0 %v3338_v11  ;;  %2915 = vmatprep.subr.bf16.mxu1 %v4162_v9  ;;  %vm2329_vm9 = vcmask 785408   ;;  %s2849_s8 = sshll.u32 %s5258_s26, 7  ;;  %s1028_s28 = scalar_lea.vmem [#allocation39], %s2763_s6 }
 0x2c4   : > { %2939 = vmatprep.subr.bf16.mxu0 %v4162_v9  ;;  %s2456_s0 = sshll.u32 %s1028_s28, 4  ;;  %s2443_s6 = scalar_lea.sflag [#allocation5], %s4877_s1  ;;  %s5098_s0 = int_to_ptr.vmem [resolvable:$true] %s2456_s0 }
 0x2c5   : > { %s4021_s26 = scalar_lea.vmem %s5098_s0, 128  ;;  %p5282_p1 = scmp.ne.s32.totalorder %s5251_s11, 0 }
 0x2c6   : > { %p4022_p4 = scmp.ne.s32.totalorder %s5098_s0, %s4021_s26 }
 0x2c8   : > { %p4023_p13 = pnand %p4022_p4, %p5282_p1 }
 0x2ca   : > { %p4024_p0 = pneg %p4023_p13 }
 0x34b   : > { %v1035_v2 = vpop.xlane.xlu0 %1034 }
 0x34c   : > { %v1037_v3 = vmul.f32 0.03125, %v1035_v2 }
 0x34e   : > { %v1038_v4 = vsub.f32 %v4931_v0, %v1037_v3 }
 0x350   : > { %v1039_v5 = vmul.f32 %v1038_v4, %v1038_v4 }
 0x352   : > { %v1040_v6 = vsel %vm1032_vm0, %v1039_v5, 0.0 }
 0x353   : > { %1041 = vadd.xlane.f32.xlu0 %v1040_v6 }
 0x3e0   : > { %v1042_v12 = vpop.xlane.xlu0 %1041 }
 0x3e1   : > { %v1043_v13 = vmul.f32 0.03125, %v1042_v12 }
 0x3e3   : > { %v1044_v14 = vadd.f32 1e-05, %v1043_v13 }
 0x3e5   : > { %3355 = vrsqrt.f32 %v1044_v14 }
 0x3ef   : > { %v3356_v16 = vpop.eup %3355 }
 0x3f0   : > { %v1046_v19 = vmul.f32 %v3356_v16, %v1038_v4  ;;  %v1347_v16 = vld [vmem:[#allocation20] sm:$0xff] }
 0x3f2   : > { %v1053_v20 = vmul.f32 %v2787_v17, %v1046_v19 }
 0x3f4   : > { %v1054_v21 = vrot.slane %v1053_v20, 7 }
 0x3f6   : > { %v1058_v22 = vsel %vm1057_vm2, 0.0, %v1054_v21 }
 0x3f7   : > { %v1059_v25 = vsub.f32 %v1058_v22, %v1053_v20 }
 0x3f9   : > { %v1085_v26 = vmul.f32 %v2790_v23, %v1059_v25  ;;  %v1076_v27 = vmul.f32 %v2789_v24, %v1059_v25  ;;  %v1067_v34 = vmul.f32 %v2788_v28, %v1059_v25  ;;  %v1094_v40 = vmul.f32 %v2791_v37, %v1059_v25 }
 0x3fb   : > { %v1086_v29 = vadd.f32 %v1085_v26, %v1053_v20  ;;  %v1077_v30 = vadd.f32 %v1076_v27, %v1053_v20  ;;  %v1068_v36 = vadd.f32 %v1067_v34, %v1053_v20  ;;  %v1095_v42 = vadd.f32 %v1094_v40, %v1053_v20  ;;  %v1730_v26 = vld [vmem:[#allocation23 + $0x10] sm:$0xff] }
 0x3fd   : > { %v1100_v32 = vpack.c.bf16 %v1086_v29, %v1086_v29  ;;  %v1222_v33 = vpack.c.bf16 %v1077_v30, %v1077_v30  ;;  %v1161_v39 = vpack.c.bf16 %v1068_v36, %v1068_v36  ;;  %v1283_v43 = vpack.c.bf16 %v1095_v42, %v1095_v42 }
 0x3ff   : > { %2912 = vmatmul.mubr.msk.bf16.vlgmr.msra.gmra.mrb[0].mxu1 %vm1032_vm0, %v1100_v32  ;;  %2928 = vmatmul.mubr.msk.bf16.vlgmr.msra.gmra.mrb[0].mxu0 %vm1032_vm0, %v1222_v33 }
 0x400   : > { %2916 = vmatpush3.bf16.msra.mxu1 %v3339_v31  ;;  %2919 = vmatprep.mubr.msk.bf16.mxu1 %vm4163_vm1, %v4162_v9  ;;  %v1530_v31 = vld [vmem:[#allocation20 + $0x8] sm:$0xff] }
 0x401   : > { %2917 = vmatprep.subr.bf16.mxu1 %v4162_v9  ;;  %2941 = vmatprep.mubr.msk.bf16.mxu0 %vm4163_vm1, %v4162_v9 }
 0x404   : > { %2918 = vmatpush3.bf16.msra.mxu1 %v3340_v35 }
 0x405   : > { %2931 = vmatprep.subr.bf16.mxu1 %v4162_v9 }
 0x407   : > { %2920 = vmatmul.mubr.msk.bf16.vlgmr.msra.gmra.mrb[4].mxu1 %vm1032_vm0, %v1161_v39 }
 0x408   : > { %2932 = vmatpush3.bf16.msra.mxu1 %v3341_v38  ;;  %2935 = vmatprep.mubr.msk.bf16.mxu1 %vm4163_vm1, %v4162_v9  ;;  %v1924_v38 = vld [vmem:[#allocation23 + $0x18] sm:$0xff] }
 0x409   : > { %2933 = vmatprep.subr.bf16.mxu1 %v4162_v9 }
 0x40c   : > { %2934 = vmatpush3.bf16.msra.mxu1 %v3342_v41 }
 0x40d   : > { %2945 = vmatprep.subr.bf16.mxu1 %v4162_v9 }
 0x40f   : > { %2936 = vmatmul.mubr.msk.bf16.vlgmr.msra.gmra.mrb[8].mxu1 %vm1032_vm0, %v1283_v43 }
 0x410   : > { %2947 = vmatprep.mubr.msk.bf16.mxu1 %vm4163_vm1, %v4162_v9  ;;  %2946 = vmatpush3.bf16.msra.mxu1 %v4164_v44 }
 0x411   : > { %2957 = vmatprep.subr.bf16.mxu1 %v4162_v9 }
 0x4d2   : > { %v1150_v45 = vpop.f32.mrb[0].mxu1  ;;  %v1272_v46 = vpop.f32.mrb[0].mxu0 }
 0x4d3   : > { %v1156_v47 = vpack.c.bf16 %v1150_v45, %v1150_v45  ;;  %v1278_v48 = vpack.c.bf16 %v1272_v46, %v1272_v46  ;;  %v2913_v49 = vpop.f32.mrb[1].mxu1  ;;  %v2929_v50 = vpop.f32.mrb[1].mxu0 }
 0x4d4   : > { %v1153_v51 = vpop.f32.mrb[2].mxu1  ;;  %v1275_v52 = vpop.f32.mrb[2].mxu0 }
 0x4d5   : > { %v2914_v53 = vpop.f32.mrb[3].mxu1  ;;  %1638 = vrot.lane.b32.xlu0 %v1278_v48, %s4165_s7  ;;  %v2930_v54 = vpop.f32.mrb[3].mxu0  ;;  %2948 = vmatmul.mubr.msk.bf16.vlgmr.msra.gmra.mrb[12].mxu1 %vm1351_vm3, %v1156_v47  ;;  %v1454_v4 = vsel %vm1400_vm4, %v1278_v48, 0 }
 0x4d6   : > { %2959 = vmatprep.mubr.msk.bf16.mxu1 %vm4163_vm1, %v4162_v9 }
 0x4d9   : > { %1633 = vperm.xlu0 %3333, %v1532_v55   ;;  %v1728_v55 = vld [vmem:[#allocation20 + $0x10] sm:$0xff] }
 0x4da   : > { %v1211_v56 = vpop.f32.mrb[4].mxu1 }
 0x4db   : > { %v1217_v58 = vpack.c.bf16 %v1211_v56, %v1211_v56  ;;  %v2921_v59 = vpop.f32.mrb[5].mxu1 }
 0x4dc   : > { %v1214_v60 = vpop.f32.mrb[6].mxu1 }
 0x4dd   : > { %1541 = vrot.lane.b32.xlu1 %v1217_v58, %s4165_s7  ;;  %v2922_v61 = vpop.f32.mrb[7].mxu1  ;;  %v1356_v62 = vsel %vm1351_vm3, %v1217_v58, 0  ;;  %1446 = vperm.xlu0 %3333, %v1348_v57  }
 0x4de   : > { %2940 = vmatpush3.bf16.xpose.msra.mxu0 %v1356_v62 }
 0x4df   : > { %2951 = vmatprep.subr.bf16.mxu0 %v4162_v9 }
 0x4e1   : > { %1538 = vrot.lane.b32.xlu1 %v1156_v47, %s4165_s7 }
 0x4e2   : > { %v4980_v63 = vpop.f32.mrb[8].mxu1 }
 0x4e3   : > { %v2937_v1 = vpop.f32.mrb[9].mxu1 }
 0x4e4   : > { %v1336_v2 = vpop.f32.mrb[10].mxu1 }
 0x4e5   : > { %1737 = vrot.lane.b32.xlu1 %v1217_v58, %s4166_s3  ;;  %v2938_v3 = vpop.f32.mrb[11].mxu1  ;;  %2942 = vmatmul.mubr.msk.bf16.vlgmr.msra.gmra.mrb[4].mxu0 %vm1351_vm3, %v1156_v47 }
 0x4e6   : > { %2952 = vmatpush3.bf16.msra.mxu0 %v1454_v4  ;;  %2953 = vmatprep.mubr.msk.bf16.mxu0 %vm4163_vm1, %v4162_v9 }
 0x4e7   : > { %2963 = vmatprep.subr.bf16.mxu0 %v4162_v9 }
 0x4e9   : > { %1735 = vrot.lane.b32.xlu1 %v1156_v47, %s4166_s3 }
 0x4ed   : > { %1931 = vrot.lane.b32.xlu1 %v1217_v58, %s4167_s29 }
 0x4f1   : > { %1929 = vrot.lane.b32.xlu1 %v1156_v47, %s4167_s29 }
 0x4f5   : > { %1833 = vrot.lane.b32.xlu1 %v1278_v48, %s4166_s3 }
 0x4f9   : > { %2027 = vrot.lane.b32.xlu1 %v1278_v48, %s4167_s29 }
 0x4fd   : > { %1829 = vperm.xlu1 %3334, %v1730_v26  }
 0x501   : > { %2023 = vperm.xlu1 %3334, %v1924_v38  }
 0x547   : > { %v1639_v7 = vpop.permute.xlu0 %1638 }
 0x548   : > { %v1644_v10 = vsel %vm1400_vm4, %v1639_v7, 0 }
 0x54f   : > { %v1542_v5 = vpop.permute.xlu1 %1541 }
 0x550   : > { %v1547_v6 = vsel %vm1351_vm3, %v1542_v5, 0 }
 0x551   : > { %2958 = vmatpush3.bf16.xpose.msra.mxu1 %v1547_v6 }
 0x552   : > { %2969 = vmatprep.subr.bf16.mxu1 %v4162_v9 }
 0x553   : > { %v1539_v8 = vpop.permute.xlu1 %1538 }
 0x557   : > { %v1738_v15 = vpop.permute.xlu1 %1737 }
 0x558   : > { %2960 = vmatmul.mubr.msk.bf16.vlgmr.msra.gmra.mrb[16].mxu1 %vm1351_vm3, %v1539_v8  ;;  %v1743_v28 = vsel %vm1351_vm3, %v1738_v15, 0  ;;  %v1634_v42 = vpop.permute.xlu0 %1633 }
 0x559   : > { %2970 = vmatpush3.bf16.msra.mxu1 %v1644_v10  ;;  %2971 = vmatprep.mubr.msk.bf16.mxu1 %vm4163_vm1, %v4162_v9 }
 0x55a   : > { %2981 = vmatprep.subr.bf16.mxu1 %v4162_v9 }
 0x55b   : > { %v1736_v19 = vpop.permute.xlu1 %1735 }
 0x55c   : > { %v1447_v43 = vpop.permute.xlu0 %1446 }
 0x55f   : > { %v1932_v25 = vpop.permute.xlu1 %1931 }
 0x560   : > { %v1937_v39 = vsel %vm1351_vm3, %v1932_v25, 0 }
 0x563   : > { %v1930_v27 = vpop.permute.xlu1 %1929 }
 0x567   : > { %v1834_v29 = vpop.permute.xlu1 %1833 }
 0x568   : > { %v1839_v30 = vsel %vm1400_vm4, %v1834_v29, 0 }
 0x56b   : > { %v2028_v40 = vpop.permute.xlu1 %2027 }
 0x56c   : > { %v2033_v41 = vsel %vm1400_vm4, %v2028_v40, 0 }
 0x5a8   : > { %v1438_v11 = vpop.f32.mrb[12].mxu1 }
 0x5a9   : > { %v2949_v12 = vpop.f32.mrb[13].mxu1  ;;  %v1449_v45 = vmul.f32 %v1447_v43, %v1438_v11 }
 0x5aa   : > { %v1441_v13 = vpop.f32.mrb[14].mxu1  ;;  %v1922_v12 = vld [vmem:[#allocation20 + $0x18] sm:$0xff] }
 0x5ab   : > { %v2950_v14 = vpop.f32.mrb[15].mxu1 }
 0x5b8   : > { %v1392_v17 = vpop.f32.mrb[4].mxu0 }
 0x5b9   : > { %v1398_v20 = vmul.f32 %v1392_v17, %v1347_v16  ;;  %v2943_v21 = vpop.f32.mrb[5].mxu0 }
 0x5ba   : > { %v1395_v22 = vpop.f32.mrb[6].mxu0 }
 0x5bb   : > { %v1399_v23 = vpack.c.bf16 %v1398_v20, %v1398_v20  ;;  %v2944_v24 = vpop.f32.mrb[7].mxu0  ;;  %v1830_v20 = vpop.permute.xlu1 %1829 }
 0x5bd   : > { %2954 = vmatmul.mubr.msk.bf16.vlgmr.msra.gmra.mrb[8].mxu0 %vm1351_vm3, %v1399_v23 }
 0x5be   : > { %2964 = vmatpush3.bf16.msra.mxu0 %v4164_v44  ;;  %2965 = vmatprep.mubr.msk.bf16.mxu0 %vm4163_vm1, %v4162_v9 }
 0x5bf   : > { %2975 = vmatprep.subr.bf16.mxu0 %v4162_v9 }
 0x5c5   : > { %2966 = vmatmul.mubr.msk.bf16.vlgmr.msra.gmra.mrb[12].mxu0 %vm1351_vm3, %v1539_v8 }
 0x5c6   : > { %2977 = vmatprep.mubr.msk.bf16.mxu0 %vm4163_vm1, %v4162_v9 }
 0x5c7   : > { %2976 = vmatpush3.bf16.xpose.msra.mxu0 %v1743_v28 }
 0x5c8   : > { %2987 = vmatprep.subr.bf16.mxu0 %v4162_v9 }
 0x5ce   : > { %2978 = vmatmul.mubr.msk.bf16.vlgmr.msra.gmra.mrb[16].mxu0 %vm1351_vm3, %v1736_v19 }
 0x5cf   : > { %2988 = vmatpush3.bf16.msra.mxu0 %v1839_v30  ;;  %2989 = vmatprep.mubr.msk.bf16.mxu0 %vm4163_vm1, %v4162_v9 }
 0x5d0   : > { %2999 = vmatprep.subr.bf16.mxu0 %v4162_v9 }
 0x62b   : > { %v1583_v32 = vpop.f32.mrb[16].mxu1 }
 0x62c   : > { %v1589_v33 = vmul.f32 %v1583_v32, %v1530_v31  ;;  %v2961_v34 = vpop.f32.mrb[17].mxu1  ;;  %v2024_v32 = vpop.permute.xlu1 %2023 }
 0x62d   : > { %v1586_v35 = vpop.f32.mrb[18].mxu1 }
 0x62e   : > { %v1590_v36 = vpack.c.bf16 %v1589_v33, %v1589_v33  ;;  %v2962_v37 = vpop.f32.mrb[19].mxu1 }
 0x630   : > { %2972 = vmatmul.mubr.msk.bf16.vlgmr.msra.gmra.mrb[20].mxu1 %vm1351_vm3, %v1590_v36 }
 0x631   : > { %2982 = vmatpush3.bf16.msra.mxu1 %v4164_v44  ;;  %2983 = vmatprep.mubr.msk.bf16.mxu1 %vm4163_vm1, %v4162_v9 }
 0x632   : > { %2993 = vmatprep.subr.bf16.mxu1 %v4162_v9 }
 0x638   : > { %2984 = vmatmul.mubr.msk.bf16.vlgmr.msra.gmra.mrb[24].mxu1 %vm1351_vm3, %v1736_v19 }
 0x639   : > { %2995 = vmatprep.mubr.msk.bf16.mxu1 %vm4163_vm1, %v4162_v9 }
 0x63a   : > { %2994 = vmatpush3.bf16.xpose.msra.mxu1 %v1937_v39 }
 0x63b   : > { %3005 = vmatprep.subr.bf16.mxu1 %v4162_v9 }
 0x641   : > { %2996 = vmatmul.mubr.msk.bf16.vlgmr.msra.gmra.mrb[28].mxu1 %vm1351_vm3, %v1930_v27 }
 0x642   : > { %3006 = vmatpush3.bf16.msra.mxu1 %v2033_v41  ;;  %3007 = vmatprep.mubr.msk.bf16.mxu1 %vm4163_vm1, %v4162_v9 }
 0x643   : > { %3019 = vmatprep.subr.bf16.mxu1 %v4162_v9 }
 0x690   : > { %v1490_v46 = vpop.f32.mrb[8].mxu0 }
 0x691   : > { %v5030_v47 = vadd.f32 %v1490_v46, %v1449_v45  ;;  %v2955_v48 = vpop.f32.mrb[9].mxu0  ;;  %v2804_v46 = vmul.f32 -1.442695, %v4980_v63 }
 0x692   : > { %v1493_v49 = vpop.f32.mrb[10].mxu0 }
 0x693   : > { %v2956_v50 = vpop.f32.mrb[11].mxu0  ;;  %3357 = vpow2.f32 %v2804_v46 }
 0x698   : > { %v1625_v51 = vpop.f32.mrb[12].mxu0 }
 0x699   : > { %v2967_v52 = vpop.f32.mrb[13].mxu0  ;;  %v1636_v62 = vmul.f32 %v1634_v42, %v1625_v51 }
 0x69a   : > { %v1628_v53 = vpop.f32.mrb[14].mxu0 }
 0x69b   : > { %v2968_v54 = vpop.f32.mrb[15].mxu0 }
 0x69d   : > { %v3358_v48 = vpop.eup %3357 }
 0x69e   : > { %v1342_v49 = vadd.f32 1.0, %v3358_v48  ;;  %v3343_v48 = vld [vmem:[#allocation29] sm:$0xff]  }
 0x6a0   : > { %3359 = vrcp.f32 %v1342_v49  ;;  %v3344_v49 = vld [vmem:[#allocation29 + $0x8] sm:$0xff]  }
 0x6a1   : > { %v1779_v56 = vpop.f32.mrb[16].mxu0 }
 0x6a2   : > { %v1785_v57 = vmul.f32 %v1779_v56, %v1728_v55  ;;  %v2979_v58 = vpop.f32.mrb[17].mxu0 }
 0x6a3   : > { %v1782_v59 = vpop.f32.mrb[18].mxu0 }
 0x6a4   : > { %v1786_v60 = vpack.c.bf16 %v1785_v57, %v1785_v57  ;;  %v2980_v61 = vpop.f32.mrb[19].mxu0 }
 0x6a6   : > { %2990 = vmatmul.mubr.msk.bf16.vlgmr.msra.gmra.mrb[20].mxu0 %vm1351_vm3, %v1786_v60 }
 0x6a7   : > { %3000 = vmatpush3.bf16.msra.mxu0 %v4164_v44  ;;  %3001 = vmatprep.mubr.msk.bf16.mxu0 %vm4163_vm1, %v4162_v9  ;;  %v1496_v44 = vsel %vm1351_vm3, %v5030_v47, 0.0 }
 0x6a8   : > { %3011 = vmatprep.subr.bf16.mxu0 %v4162_v9 }
 0x6aa   : > { %v3360_v55 = vpop.eup %3359 }
 0x6ab   : > { %v1345_v56 = vmul.f32 %v3360_v55, %v4980_v63 }
 0x6ad   : > { %v1346_v57 = vpack.c.bf16 %v1345_v56, %v1345_v56 }
 0x6ae   : > { %3002 = vmatmul.mubr.msk.bf16.vlgmr.msra.gmra.mrb[24].mxu0 %vm1351_vm3, %v1930_v27 }
 0x6af   : > { %3015 = vmatprep.mubr.msk.bf16.mxu0 %vm4163_vm1, %v4162_v9  ;;  %v1524_v58 = vunpack.c.l.bf16 %v1346_v57  ;;  %3012 = vmatpush3.bf16.msra.mxu0 %v3343_v48 }
 0x6b0   : > { %3013 = vmatprep.subr.bf16.mxu0 %v4162_v9 }
 0x6b3   : > { %3014 = vmatpush3.bf16.msra.mxu0 %v3344_v49 }
 0x6b4   : > { %3027 = vmatprep.subr.bf16.mxu0 %v4162_v9 }
 0x703   : > { %v1680_v1 = vpop.f32.mrb[20].mxu1 }
 0x704   : > { %v1681_v2 = vadd.f32 %v1680_v1, %v1636_v62  ;;  %v2973_v3 = vpop.f32.mrb[21].mxu1 }
 0x705   : > { %v1683_v4 = vpop.f32.mrb[22].mxu1 }
 0x706   : > { %v2974_v5 = vpop.f32.mrb[23].mxu1  ;;  %v1686_v6 = vsel %vm1351_vm3, %v1681_v2, 0.0 }
 0x707   : > { %1687 = vadd.xlane.f32.xlu1 %v1686_v6 }
 0x70b   : > { %1497 = vadd.xlane.f32.xlu1 %v1496_v44  ;;  %v1821_v7 = vpop.f32.mrb[24].mxu1 }
 0x70c   : > { %v2985_v8 = vpop.f32.mrb[25].mxu1  ;;  %v1832_v21 = vmul.f32 %v1830_v20, %v1821_v7 }
 0x70d   : > { %v1824_v10 = vpop.f32.mrb[26].mxu1 }
 0x70e   : > { %v2986_v11 = vpop.f32.mrb[27].mxu1  ;;  %v2813_v10 = vld [vmem:[#allocation26 + $0x1] ss:$0 sm:$0xff] }
 0x714   : > { %v1973_v13 = vpop.f32.mrb[28].mxu1 }
 0x715   : > { %v1979_v14 = vmul.f32 %v1973_v13, %v1922_v12  ;;  %v2997_v15 = vpop.f32.mrb[29].mxu1  ;;  %v2814_v13 = vld [vmem:[#allocation27 + $0x1] ss:$0 sm:$0xff] }
 0x716   : > { %v1976_v16 = vpop.f32.mrb[30].mxu1 }
 0x717   : > { %v1980_v17 = vpack.c.bf16 %v1979_v14, %v1979_v14  ;;  %v2998_v19 = vpop.f32.mrb[31].mxu1 }
 0x719   : > { %3008 = vmatmul.mubr.msk.bf16.vlgmr.msra.gmra.mrb[32].mxu1 %vm1351_vm3, %v1980_v17 }
 0x71a   : > { %3023 = vmatprep.mubr.msk.bf16.mxu1 %vm4163_vm1, %v4162_v9 }
 0x779   : > { %v1875_v22 = vpop.f32.mrb[20].mxu0 }
 0x77a   : > { %v1876_v23 = vadd.f32 %v1875_v22, %v1832_v21  ;;  %v2991_v24 = vpop.f32.mrb[21].mxu0 }
 0x77b   : > { %v1878_v25 = vpop.f32.mrb[22].mxu0  ;;  %v2808_v24 = vld [vmem:[#allocation26] ss:$0 sm:$0xff] }
 0x77c   : > { %v2992_v26 = vpop.f32.mrb[23].mxu0  ;;  %v1881_v27 = vsel %vm1351_vm3, %v1876_v23, 0.0 }
 0x77d   : > { %1882 = vadd.xlane.f32.xlu0 %v1881_v27  ;;  %v2809_v26 = vld [vmem:[#allocation27] ss:$0 sm:$0xff] }
 0x781   : > { %v2015_v28 = vpop.f32.mrb[24].mxu0 }
 0x782   : > { %v3003_v29 = vpop.f32.mrb[25].mxu0  ;;  %v2026_v35 = vmul.f32 %v2024_v32, %v2015_v28 }
 0x783   : > { %v2018_v30 = vpop.f32.mrb[26].mxu0 }
 0x784   : > { %v3004_v31 = vpop.f32.mrb[27].mxu0 }
 0x794   : > { %v1688_v33 = vpop.xlane.xlu1 %1687 }
 0x795   : > { %v1689_v34 = vmul.f32 0.125, %v1688_v33 }
 0x797   : > { %v1690_v36 = vsub.f32 %v1681_v2, %v1689_v34 }
 0x798   : > { %v1498_v59 = vpop.xlane.xlu1 %1497 }
 0x799   : > { %v1691_v43 = vmul.f32 %v1690_v36, %v1690_v36  ;;  %v1500_v60 = vmul.f32 0.125, %v1498_v59 }
 0x79b   : > { %v1692_v45 = vsel %vm1351_vm3, %v1691_v43, 0.0  ;;  %v1501_v61 = vsub.f32 %v5030_v47, %v1500_v60 }
 0x79d   : > { %v1502_v62 = vmul.f32 %v1501_v61, %v1501_v61 }
 0x79f   : > { %v1503_v1 = vsel %vm1351_vm3, %v1502_v62, 0.0 }
 0x7ec   : > { %v2069_v37 = vpop.f32.mrb[32].mxu1 }
 0x7ed   : > { %v2070_v38 = vadd.f32 %v2069_v37, %v2026_v35  ;;  %v3009_v39 = vpop.f32.mrb[33].mxu1  ;;  %v2819_v35 = vld [vmem:[#allocation26 + $0x2] ss:$0 sm:$0xff] }
 0x7ee   : > { %v2072_v40 = vpop.f32.mrb[34].mxu1 }
 0x7ef   : > { %v3010_v41 = vpop.f32.mrb[35].mxu1  ;;  %v2075_v42 = vsel %vm1351_vm3, %v2070_v38, 0.0 }
 0x7f0   : > { %2076 = vadd.xlane.f32.xlu0 %v2075_v42 }
 0x7f4   : > { %1693 = vadd.xlane.f32.xlu0 %v1692_v45 }
 0x80a   : > { %v1883_v50 = vpop.xlane.xlu0 %1882 }
 0x80b   : > { %v1884_v51 = vmul.f32 0.125, %v1883_v50 }
 0x80d   : > { %v1885_v52 = vsub.f32 %v1876_v23, %v1884_v51  ;;  %v2825_v51 = vld [vmem:[#allocation26 + $0x3] ss:$0 sm:$0xff] }
 0x80f   : > { %v1886_v53 = vmul.f32 %v1885_v52, %v1885_v52 }
 0x811   : > { %v1887_v54 = vsel %vm1351_vm3, %v1886_v53, 0.0  ;;  %v2826_v53 = vld [vmem:[#allocation27 + $0x3] ss:$0 sm:$0xff] }
 0x812   : > { %1888 = vadd.xlane.f32.xlu1 %v1887_v54 }
 0x823   : > { %1714 = vrot.lane.b32.xlu1 %v1524_v58, %s4165_s7 }
 0x827   : > { %2102 = vrot.lane.b32.xlu1 %v1524_v58, %s4167_s29 }
 0x84b   : > { %1504 = vadd.xlane.f32.xlu1 %v1503_v1 }
 0x87d   : > { %v2077_v2 = vpop.xlane.xlu0 %2076 }
 0x87e   : > { %v2078_v3 = vmul.f32 0.125, %v2077_v2 }
 0x880   : > { %v5056_v4 = vsub.f32 %v2070_v38, %v2078_v3  ;;  %v2820_v38 = vld [vmem:[#allocation27 + $0x2] ss:$0 sm:$0xff] }
 0x881   : > { %v1694_v5 = vpop.xlane.xlu0 %1693 }
 0x882   : > { %v2080_v63 = vmul.f32 %v5056_v4, %v5056_v4  ;;  %v1695_v44 = vmul.f32 0.125, %v1694_v5 }
 0x884   : > { %v2081_v6 = vsel %vm1351_vm3, %v2080_v63, 0.0  ;;  %v1696_v7 = vadd.f32 0.00064, %v1695_v44 }
 0x885   : > { %2082 = vadd.xlane.f32.xlu0 %v2081_v6 }
 0x886   : > { %3361 = vrsqrt.f32 %v1696_v7 }
 0x890   : > { %v3362_v8 = vpop.eup %3361 }
 0x891   : > { %v1698_v47 = vmul.f32 %v3362_v8, %v1690_v36  ;;  %v3345_v8 = vld [vmem:[#allocation35] sm:$0xff]  }
 0x892   : > { %3020 = vmatpush3.bf16.msra.mxu1 %v3345_v8 }
 0x893   : > { %v1705_v11 = vmul.f32 %v2813_v10, %v1698_v47  ;;  %v3346_v47 = vld [vmem:[#allocation35 + $0x8] sm:$0xff]   ;;  %3021 = vmatprep.subr.bf16.mxu1 %v4162_v9  ;;  %v3350_v10 = vld [vmem:[#allocation36 + $0x8] sm:$0xff]  }
 0x895   : > { %v1712_v14 = vadd.f32 %v2814_v13, %v1705_v11  ;;  %v3351_v11 = vld [vmem:[#allocation36 + $0x10] sm:$0xff]  }
 0x896   : > { %3022 = vmatpush3.bf16.msra.mxu1 %v3346_v47 }
 0x897   : > { %3043 = vmatprep.subr.bf16.mxu1 %v4162_v9 }
 0x89b   : > { %1908 = vrot.lane.b32.xlu0 %v1524_v58, %s4166_s3  ;;  %s5281_s3 = sld [smem:[#allocation72_spill]] }
 0x89f   : > { %v1889_v12 = vpop.xlane.xlu1 %1888 }
 0x8a0   : > { %v1890_v31 = vmul.f32 0.125, %v1889_v12  ;;  %v3352_v12 = vld [vmem:[#allocation36 + $0x18] sm:$0xff]  }
 0x8a1   : > { %s5096_s29 = scalar_lea.hbm %s5281_s3, %s2849_s8 }
 0x8a2   : > { %v1891_v32 = vadd.f32 0.00064, %v1890_v31  ;;  %v3348_v31 = vld [vmem:[#allocation38 + $0x8] sm:$0xff]  }
 0x8a3   : > { %v1715_v15 = vpop.permute.xlu1 %1714 }
 0x8a4   : > { %v1717_v16 = vmul.f32 %v1715_v15, %v1712_v14 }
 0x8a6   : > { %v2852_v17 = vpack.c.bf16 %v1717_v16, %v1717_v16 }
 0x8a7   : > { %v2103_v19 = vpop.permute.xlu1 %2102 }
 0x8a8   : > { %1722 = vrot.lane.b32.xlu0 %v2852_v17, %s4168_s24  ;;  %v2831_v17 = vld [vmem:[#allocation30] ss:$0 sm:$0xff]  ;;  %s4171_s24 = smov [#allocation39]  }
 0x8d8   : > { %v1505_v20 = vpop.xlane.xlu1 %1504 }
 0x8d9   : > { %v1506_v21 = vmul.f32 0.125, %v1505_v20 }
 0x8db   : > { %v1507_v22 = vadd.f32 0.00064, %v1506_v21 }
 0x8dd   : > { %3363 = vrsqrt.f32 %v1507_v22 }
 0x8de   : > { %3365 = vrsqrt.f32 %v1891_v32 }
 0x8e7   : > { %v3364_v23 = vpop.eup %3363 }
 0x8e8   : > { %v1509_v25 = vmul.f32 %v3364_v23, %v1501_v61  ;;  %v3366_v33 = vpop.eup %3365  ;;  %v2832_v23 = vld [vmem:[#allocation32] ss:$0 sm:$0xff] }
 0x8e9   : > { %v1893_v34 = vmul.f32 %v3366_v33, %v1885_v52  ;;  %v3353_v33 = vld [vmem:[#allocation36 + $0x20] sm:$0xff]  }
 0x8ea   : > { %v1516_v27 = vmul.f32 %v2808_v24, %v1509_v25 }
 0x8eb   : > { %v1900_v36 = vmul.f32 %v2819_v35, %v1893_v34  ;;  %v3354_v34 = vld [vmem:[#allocation36 + $0x28] sm:$0xff]  }
 0x8ec   : > { %v1523_v28 = vadd.f32 %v2809_v26, %v1516_v27  ;;  %v2833_v26 = vld [vmem:[#allocation33] ss:$0 sm:$0xff] }
 0x8ed   : > { %v1907_v41 = vadd.f32 %v2820_v38, %v1900_v36 }
 0x8ee   : > { %v1525_v29 = vmul.f32 %v1524_v58, %v1523_v28  ;;  %v3347_v28 = vld [vmem:[#allocation38] sm:$0xff]  }
 0x8f0   : > { %v1526_v30 = vpack.c.bf16 %v1525_v29, %v1525_v29 }
 0x8f2   : > { %1528 = vst.msk [vmem:[#allocation2] sm:$0xf] %vm1527_vm5, %v1526_v30 }
 0x912   : > { %v2083_v37 = vpop.xlane.xlu0 %2082 }
 0x913   : > { %v2084_v39 = vmul.f32 0.125, %v2083_v37 }
 0x915   : > { %v2085_v40 = vadd.f32 0.00064, %v2084_v39 }
 0x916   : > { %v1909_v42 = vpop.permute.xlu0 %1908 }
 0x917   : > { %3367 = vrsqrt.f32 %v2085_v40  ;;  %v1911_v43 = vmul.f32 %v1909_v42, %v1907_v41 }
 0x919   : > { %v2853_v45 = vpack.c.bf16 %v1911_v43, %v1911_v43 }
 0x91a   : > { %v1723_v46 = vpop.permute.xlu0 %1722 }
 0x91b   : > { %1726 = vst.msk [vmem:[#allocation2] sm:$0xf] %vm1725_vm6, %v1723_v46  ;;  %1916 = vrot.lane.b32.xlu0 %v2853_v45, %s4169_s13  ;;  %s4025_s13 = sshll.u32 %s4171_s24, 4  ;;  %s4026_s13 = int_to_ptr.vmem [resolvable:$false] %s4025_s13 }
 0x91c   : > { %p4028_p2 = scmp.lt.s32.totalorder %s5098_s0, %s4026_s13 }
 0x921   : > { %v3368_v50 = vpop.eup %3367 }
 0x922   : > { %v2087_v52 = vmul.f32 %v3368_v50, %v5056_v4 }
 0x924   : > { %v2094_v54 = vmul.f32 %v2825_v51, %v2087_v52 }
 0x926   : > { %v2101_v55 = vadd.f32 %v2826_v53, %v2094_v54 }
 0x928   : > { %v2105_v56 = vmul.f32 %v2103_v19, %v2101_v55 }
 0x92a   : > { %v2854_v57 = vpack.c.bf16 %v2105_v56, %v2105_v56 }
 0x92c   : > { %2110 = vrot.lane.b32.xlu0 %v2854_v57, %s4170_s30  ;;  %s4027_s30 = scalar_lea.vmem %s4026_s13, 256 }
 0x92d   : > { %p4029_p3 = scmp.lt.s32.totalorder %s4027_s30, %s4021_s26 }
 0x92f   : > { %p4030_p10 = por %p4029_p3, %p4028_p2 }
 0x931   : > { %p4031_p11 = pnand %p4030_p10, %p4024_p0 }
 0x98d   : > { %v1917_v58 = vpop.permute.xlu0 %1916 }
 0x98e   : > { %1920 = vst.msk [vmem:[#allocation2] sm:$0xf] %vm1919_vm7, %v1917_v58 }
 0x99e   : > { %v2111_v59 = vpop.permute.xlu0 %2110 }
 0x99f   : > { %2114 = vst.msk [vmem:[#allocation2] sm:$0xf] %vm2113_vm8, %v2111_v59 }
 0x9a6   : > { %v2115_v60 = vld [vmem:[#allocation2] sm:$0xf] }
 0x9a7   : > { %3016 = vmatmul.mubr.msk.bf16.vlgmr.msra.gmra.mrb[28].mxu0 %vm1032_vm0, %v2115_v60 }
 0x9a8   : > { %3039 = vmatprep.mubr.msk.bf16.mxu0 %vm4163_vm1, %v4162_v9 }
 0xa7a   : > { %v2169_v61 = vpop.f32.mrb[28].mxu0 }
 0xa7b   : > { %v5069_v62 = vadd.f32 %v2169_v61, %v4931_v0  ;;  %v3017_v1 = vpop.f32.mrb[29].mxu0  ;;  %v3349_v0 = vld [vmem:[#allocation36] sm:$0xff]  }
 0xa7c   : > { %v2172_v2 = vpop.f32.mrb[30].mxu0  ;;  %3028 = vmatpush3.bf16.msra.mxu0 %v3349_v0 }
 0xa7d   : > { %v3018_v3 = vpop.f32.mrb[31].mxu0  ;;  %v2177_v4 = vsel %vm1032_vm0, %v5069_v62, 0.0  ;;  %3029 = vmatprep.subr.bf16.mxu0 %v4162_v9 }
 0xa7e   : > { %2178 = vadd.xlane.f32.xlu0 %v2177_v4 }
 0xa80   : > { %3030 = vmatpush3.bf16.msra.mxu0 %v3350_v10 }
 0xa81   : > { %3031 = vmatprep.subr.bf16.mxu0 %v4162_v9 }
 0xa84   : > { %3032 = vmatpush3.bf16.msra.mxu0 %v3351_v11 }
 0xa85   : > { %3033 = vmatprep.subr.bf16.mxu0 %v4162_v9 }
 0xa88   : > { %3034 = vmatpush3.bf16.msra.mxu0 %v3352_v12 }
 0xa89   : > { %3035 = vmatprep.subr.bf16.mxu0 %v4162_v9 }
 0xa8c   : > { %3036 = vmatpush3.bf16.msra.mxu0 %v3353_v33 }
 0xa8d   : > { %3037 = vmatprep.subr.bf16.mxu0 %v4162_v9 }
 0xa90   : > { %3038 = vmatpush3.bf16.msra.mxu0 %v3354_v34 }
 0xb0b   : > { %v2179_v5 = vpop.xlane.xlu0 %2178 }
 0xb0c   : > { %v2180_v63 = vmul.f32 0.03125, %v2179_v5 }
 0xb0e   : > { %v2181_v6 = vsub.f32 %v5069_v62, %v2180_v63 }
 0xb10   : > { %v2182_v44 = vmul.f32 %v2181_v6, %v2181_v6 }
 0xb12   : > { %v2183_v7 = vsel %vm1032_vm0, %v2182_v44, 0.0 }
 0xb13   : > { %2184 = vadd.xlane.f32.xlu1 %v2183_v7 }
 0xba0   : > { %v2185_v13 = vpop.xlane.xlu1 %2184 }
 0xba1   : > { %v2186_v14 = vmul.f32 0.03125, %v2185_v13 }
 0xba3   : > { %v2187_v15 = vadd.f32 1e-05, %v2186_v14 }
 0xba5   : > { %3369 = vrsqrt.f32 %v2187_v15 }
 0xbaf   : > { %v3370_v16 = vpop.eup %3369 }
 0xbb0   : > { %v2189_v19 = vmul.f32 %v3370_v16, %v2181_v6 }
 0xbb2   : > { %v2196_v20 = vmul.f32 %v2831_v17, %v2189_v19 }
 0xbb4   : > { %v2197_v21 = vrot.slane %v2196_v20, 7 }
 0xbb6   : > { %v2198_v22 = vsel %vm1057_vm2, 0.0, %v2197_v21 }
 0xbb7   : > { %v2199_v24 = vsub.f32 %v2198_v22, %v2196_v20 }
 0xbb9   : > { %v2207_v25 = vmul.f32 %v2832_v23, %v2199_v24  ;;  %v2217_v30 = vmul.f32 %v2833_v26, %v2199_v24 }
 0xbbb   : > { %v2208_v27 = vadd.f32 %v2207_v25, %v2196_v20  ;;  %v2218_v32 = vadd.f32 %v2217_v30, %v2196_v20 }
 0xbbd   : > { %v2209_v29 = vpack.c.bf16 %v2208_v27, %v2208_v27  ;;  %v2377_v18 = vpack.c.bf16 %v2218_v32, %v2218_v32 }
 0xbbf   : > { %3024 = vmatmul.mubr.msk.bf16.vlgmr.msra.gmra.mrb[36].mxu1 %vm1032_vm0, %v2209_v29 }
 0xbc0   : > { %3044 = vmatpush3.bf16.msra.mxu1 %v3347_v28  ;;  %3047 = vmatprep.mubr.msk.bf16.mxu1 %vm4163_vm1, %v4162_v9 }
 0xbc1   : > { %3045 = vmatprep.subr.bf16.mxu1 %v4162_v9 }
 0xbc4   : > { %3046 = vmatpush3.bf16.msra.mxu1 %v3348_v31 }
 0xbc7   : > { %3048 = vmatmul.mubr.msk.bf16.vlgmr.msra.gmra.mrb[40].mxu1 %vm1032_vm0, %v2377_v18 }
 0xc92   : > { %v2272_v35 = vpop.f32.mrb[36].mxu1 }
 0xc93   : > { %v2278_v36 = vmax.f32 %v2272_v35, 0.0  ;;  %v3025_v37 = vpop.f32.mrb[37].mxu1 }
 0xc94   : > { %v2275_v38 = vpop.f32.mrb[38].mxu1 }
 0xc95   : > { %v2279_v39 = vmul.f32 %v2278_v36, %v2278_v36  ;;  %v3026_v40 = vpop.f32.mrb[39].mxu1 }
 0xc97   : > { %v2280_v41 = vpack.c.bf16 %v2279_v39, %v2279_v39 }
 0xc99   : > { %3040 = vmatmul.mubr.msk.bf16.vlgmr.msra.gmra.mrb[32].mxu0 %vm2329_vm9, %v2280_v41 }
 0xc9a   : > { %v2427_v42 = vpop.f32.mrb[40].mxu1 }
 0xc9b   : > { %v3049_v43 = vpop.f32.mrb[41].mxu1  ;;  %v2847_v48 = vmul.f32 -1.442695, %v2427_v42 }
 0xc9c   : > { %v2430_v45 = vpop.f32.mrb[42].mxu1 }
 0xc9d   : > { %v3050_v46 = vpop.f32.mrb[43].mxu1  ;;  %3371 = vpow2.f32 %v2847_v48 }
 0xca7   : > { %v3372_v9 = vpop.eup %3371 }
 0xca8   : > { %v2436_v49 = vadd.f32 1.0, %v3372_v9 }
 0xcaa   : > { %3373 = vrcp.f32 %v2436_v49 }
 0xcb4   : > { %v3374_v50 = vpop.eup %3373 }
 0xd6c   : > { %v2367_v51 = vpop.f32.mrb[32].mxu0 }
 0xd6d   : > { %v2439_v52 = vmul.f32 %v3374_v50, %v2367_v51  ;;  %v3041_v53 = vpop.f32.mrb[33].mxu0 }
 0xd6e   : > { %v2370_v54 = vpop.f32.mrb[34].mxu0 }
 0xd6f   : > { %v2440_v55 = vadd.f32 %v2439_v52, %v5069_v62  ;;  %v3042_v56 = vpop.f32.mrb[35].mxu0 }
 0xd71   : > { %2441 = vst.msk [vmem:[%s1028_s28] sm:$0xff] %vm1032_vm0, %v2440_v55 }
 0xd72   : > { %4034 = shalt.err (!%p4031_p11)
}
 0xd73   : > { %s4035_s1 = scalar_lea.hbm %s5096_s29, 128  ;;  %s4039_s4 = scalar_lea.hbm %s5281_s3, 256 }
 0xd74   : > { %p4036_p12 = scmp.ne.s32.totalorder %s5096_s29, %s4035_s1  ;;  %p4040_p7 = scmp.lt.u32.totalorder %s5096_s29, %s5281_s3 }
 0xd75   : > { %p4041_p6 = scmp.lt.u32.totalorder %s4039_s4, %s4035_s1  ;;  %p4043_p4 = scmp.lt.u32.totalorder %s4035_s1, %s5096_s29 }
 0xd76   : > { %p4037_p8 = pnand %p4036_p12, %p5282_p1 }
 0xd77   : > { %p4042_p9 = por %p4041_p6, %p4040_p7 }
 0xd78   : > { %p4038_p5 = pneg %p4037_p8 }
 0xd79   : > { %p4044_p13 = por %p4043_p4, %p4042_p9 }
 0xd7b   : > { %p4045_p0 = pnand %p4044_p13, %p4038_p5 }
 0xd7d   : > { %4048 = shalt.err (!%p4045_p0)
}
 0xd7e   : > { %3141 = dma.vmem_to_hbm [thread:$0]  (%p5282_p1), %s5098_s0, 128, %s5096_s29, %s2443_s6  }
 0xd7f PF: > { %s5283_s26 = sld [smem:[#allocation53_spill]]  ;;  %s5284_s13 = sld [smem:[#allocation56_spill]] }
 0xd80   : > { %p5285_p2 = scmp.ne.s32.totalorder %s5252_s9, 0 }
 0xd85   : > { %s2468_s30 = sand.u32 1, %s5283_s26   ;;  %p5286_p3 = scmp.ge.s32.totalorder %s5284_s13, 2 }
 0xd86   : > { %s2469_s8 = scalar_lea.sflag [#allocation5], %s2468_s30 }
 0xd87   : > { %p3215_p10 = pnand %p5286_p3, %p5285_p2 }
 0xd89   : > { %4114 = dma.done.wait (!%p3215_p10), %s2469_s8, 128  }
 0xd8a   : > { %4116 = vsyncadd (!%p3215_p10), %s2469_s8, 4294967168  ;;  %s5287_s4 = sld [smem:[#allocation54_spill]]  ;;  %s5288_s30 = sld [smem:[#allocation55_spill]] }
 0xd8b   : > { %p47_p11 = scmp.ge.s32.totalorder %s4801_s25, 4   ;;  %s5289_s24 = smov %s4812_s5 }
 0xd8d   :  { %49 = sbr.rel (!%p47_p11) target bundleno = 31 (0x1f), region = 257 }
 0xd94   :  { %2474 = vsyncpa [#allocation4], 1 }
 0xd95   :  { %2476 = vsyncpa [#allocation4 + $0x1], 1 }
 0xd96   :  { %2477 = vsyncpa [#allocation7], 1 }
 0xd97   :  { %2478 = vsyncpa [#allocation10], 1 }
 0xd98   :  { %2479 = vsyncpa [#allocation13], 1 }
 0xd99   :  { %2480 = vsyncpa [#allocation16], 1 }
 0xd9a   :  { %2481 = vsyncpa [#allocation19], 1 }
 0xd9b   :  { %2482 = vsyncpa [#allocation22], 1 }
 0xd9c   :  { %2483 = vsyncpa [#allocation25], 1 }
 0xd9d   :  { %2484 = vsyncpa [#allocation28], 1 }
 0xd9e   :  { %2485 = vsyncpa [#allocation31], 1 }
 0xd9f   :  { %2486 = vsyncpa [#allocation34], 1 }
 0xda0   :  { %2487 = vsyncpa [#allocation37], 1 }
 0xda1   :  { %2488 = vsyncpa [#allocation5], 1 }
 0xda2   :  { %2490 = vsyncpa [#allocation5 + $0x1], 1 }

</bundles_post_ra>
